<compile_context>
chip_gen: v7x
topology: tpu7x:2x2x1
jax: 0.10.0
libtpu: 0.0.40
codegen_flags: <defaults>
</compile_context>

<pallas_src>
import functools
import math

import jax
import jax.numpy as jnp
from jax.experimental import pallas as pl
from jax.experimental.pallas import tpu as pltpu


# ----------------------------------------------------------------------------
# Helpers
# ----------------------------------------------------------------------------
def _layer_norm(x, gamma, beta, eps=1e-5):
    mean = jnp.mean(x, axis=-1, keepdims=True)
    var = jnp.mean((x - mean) ** 2, axis=-1, keepdims=True)
    inv = jax.lax.rsqrt(var + eps)
    return (x - mean) * inv * gamma + beta


# ----------------------------------------------------------------------------
# Fused Pallas kernel: one encoder layer per grid step, residual carried in VMEM.
# ----------------------------------------------------------------------------
def _make_stack_kernel(num_heads: int, head_dim: int, batch: int, seq: int,
                       embed: int, compute_dtype):
    E = embed
    M = seq * batch          # rows are seq-major: row = s * batch + b
    BH = batch * num_heads

    def kernel(x_ref,
               wqkv_ref, bqkv_ref, wo_ref, bo_ref,
               w1_ref, b1_ref, w2_ref, b2_ref,
               g1_ref, be1_ref, g2_ref, be2_ref,
               o_ref, x_scr):
        l = pl.program_id(0)

        # ---- initialize the residual carry from the input on the first layer
        @pl.when(l == 0)
        def _():
            x_scr[...] = x_ref[...]

        x = x_scr[...]                                           # (M, E) f32

        # Per-layer weight tiles (leading block dim of size 1 -> squeeze by [0]).
        wqkv = wqkv_ref[0]                                       # (E, 3E)
        bqkv = bqkv_ref[0]                                       # (1, 3E) f32
        wo = wo_ref[0]                                           # (E, E)
        bo = bo_ref[0]                                           # (1, E)  f32
        w1 = w1_ref[0]                                           # (E, F)
        b1 = b1_ref[0]                                           # (1, F)  f32
        w2 = w2_ref[0]                                           # (F, E)
        b2 = b2_ref[0]                                           # (1, E)  f32
        g1, be1 = g1_ref[0], be1_ref[0]                          # (1, E)  f32
        g2, be2 = g2_ref[0], be2_ref[0]                          # (1, E)  f32

        # ---- fused QKV projection (Q scale pre-folded into wqkv/bqkv) --------
        qkv = jnp.dot(x.astype(compute_dtype), wqkv.astype(compute_dtype),
                      preferred_element_type=jnp.float32) + bqkv  # (M, 3E) f32

        # ---- batched-head self-attention -------------------------------------
        def to_heads(t):                                          # (M,E)->(BH,S,Dh)
            t = t.reshape(seq, batch, num_heads, head_dim)
            return jnp.transpose(t, (1, 2, 0, 3)).reshape(BH, seq, head_dim)

        q = to_heads(qkv[:, :E]).astype(compute_dtype)
        k = to_heads(qkv[:, E:2 * E]).astype(compute_dtype)
        v = to_heads(qkv[:, 2 * E:]).astype(compute_dtype)

        s = jnp.einsum('gqd,gkd->gqk', q, k,
                       preferred_element_type=jnp.float32)        # (BH, S, S)
        s = s - jnp.max(s, axis=-1, keepdims=True)
        p = jnp.exp(s)
        p = p / jnp.sum(p, axis=-1, keepdims=True)                # exact softmax

        ctx = jnp.einsum('gqk,gkd->gqd', p.astype(compute_dtype), v,
                         preferred_element_type=jnp.float32)      # (BH, S, Dh)
        ctx = jnp.transpose(ctx.reshape(batch, num_heads, seq, head_dim),
                            (2, 0, 1, 3)).reshape(M, E)           # (M, E)

        # Single K=E output projection (no per-head matmuls / concatenate).
        attn = jnp.dot(ctx.astype(compute_dtype), wo.astype(compute_dtype),
                       preferred_element_type=jnp.float32) + bo   # (M, E)

        # ---- residual + layernorm 1 -------------------------------------------
        y = _layer_norm(x + attn, g1, be1)

        # ---- feed-forward ------------------------------------------------------
        hdn = jnp.dot(y.astype(compute_dtype), w1.astype(compute_dtype),
                      preferred_element_type=jnp.float32) + b1    # (M, F)
        hdn = jnp.maximum(hdn, 0.0)
        ff = jnp.dot(hdn.astype(compute_dtype), w2.astype(compute_dtype),
                     preferred_element_type=jnp.float32) + b2     # (M, E)

        # ---- residual + layernorm 2 --------------------------------------------
        x_new = _layer_norm(y + ff, g2, be2)
        x_scr[...] = x_new                                        # carry to next layer

        @pl.when(l == pl.num_programs(0) - 1)
        def _():
            o_ref[...] = x_new.astype(o_ref.dtype)

    return kernel


# ----------------------------------------------------------------------------
# Public wrapper: SequentialTransformerEncoder forward.
# ----------------------------------------------------------------------------
@functools.partial(jax.jit, static_argnames=("num_heads", "compute_dtype"))
def sequential_transformer_encoder(x_sbe, params, *, num_heads,
                                   compute_dtype=jnp.float32):
    """x_sbe: (seq, batch, embed) float32 — PyTorch MHA default layout."""
    S, B, E = x_sbe.shape
    L = params["wqkv"].shape[0]
    F_dim = params["w1"].shape[-1]
    head_dim = E // num_heads
    M = S * B

    # Seq-major flattening: free reshape, no transpose / HBM round trip.
    x_flat = x_sbe.reshape(M, E)

    # Fold 1/sqrt(head_dim) into the Q third of the fused QKV projection.
    scale = 1.0 / math.sqrt(head_dim)
    q_scale = jnp.concatenate([jnp.full((E,), scale, jnp.float32),
                               jnp.ones((2 * E,), jnp.float32)])
    wqkv = (params["wqkv"] * q_scale).astype(compute_dtype)       # (L, E, 3E)
    bqkv = params["bqkv"] * q_scale                                # (L, 1, 3E) f32

    # Large matmul operands in the compute dtype (bf16 halves DMA/VMEM bytes);
    # biases / layernorm params stay f32.
    wo = params["wo"].astype(compute_dtype)
    w1 = params["w1"].astype(compute_dtype)
    w2 = params["w2"].astype(compute_dtype)

    weight_args = (wqkv, bqkv, wo, params["bo"],
                   w1, params["b1"], w2, params["b2"],
                   params["g1"], params["be1"], params["g2"], params["be2"])

    kernel = _make_stack_kernel(num_heads, head_dim, B, S, E, compute_dtype)

    # Per-layer weight blocks, indexed by the layer grid id.
    def wspec(arr):
        return pl.BlockSpec((1,) + arr.shape[1:], lambda l: (l, 0, 0))

    act_spec = pl.BlockSpec((M, E), lambda l: (0, 0))   # same block for every l

    # VMEM budget: ~2 layers of weights (double buffer) + activation slabs.
    per_layer_w_bytes = sum(int(a.size) * a.dtype.itemsize for a in weight_args) // L
    act_bytes = 4 * M * (4 * E + 3 * E + F_dim) + 4 * B * num_heads * S * S * 2
    vmem_limit = int(min(max(2 * (2 * per_layer_w_bytes + act_bytes),
                             32 * 1024 * 1024),
                         64 * 1024 * 1024))

    # Advisory cost estimate for the XLA scheduler.
    flops = L * (2 * M * E * 3 * E            # fused QKV
                 + 4 * B * S * S * E          # scores + p@v over all heads
                 + 2 * M * E * E              # output projection
                 + 4 * M * E * F_dim)         # FFN
    transcendentals = L * (num_heads * B * S * S + 2 * M)
    bytes_accessed = 2 * M * E * 4 + L * per_layer_w_bytes

    grid_spec = pltpu.PrefetchScalarGridSpec(
        num_scalar_prefetch=0,
        grid=(L,),
        in_specs=[act_spec] + [wspec(a) for a in weight_args],
        out_specs=act_spec,
        scratch_shapes=[pltpu.VMEM((M, E), jnp.float32)],   # residual carry
    )

    out_flat = pl.pallas_call(
        kernel,
        out_shape=jax.ShapeDtypeStruct((M, E), jnp.float32),
        grid_spec=grid_spec,
        compiler_params=pltpu.CompilerParams(
            dimension_semantics=("arbitrary",),
            vmem_limit_bytes=vmem_limit),
        cost_estimate=pl.CostEstimate(flops=int(flops),
                                      transcendentals=int(transcendentals),
                                      bytes_accessed=int(bytes_accessed)),
    )(x_flat, *weight_args)

    return out_flat.reshape(S, B, E)


# ----------------------------------------------------------------------------
# Parameter init (deterministic; weights pre-transposed so kernel does x @ W + b,
# per-layer params stacked along a leading L axis).
# ----------------------------------------------------------------------------
def _init_layer_params(key, embed_dim, feedforward_dim):
    ks = jax.random.split(key, 6)
    std = 0.02
    wq = jax.random.normal(ks[0], (embed_dim, embed_dim), jnp.float32) * std
    wk = jax.random.normal(ks[1], (embed_dim, embed_dim), jnp.float32) * std
    wv = jax.random.normal(ks[2], (embed_dim, embed_dim), jnp.float32) * std
    wo = jax.random.normal(ks[3], (embed_dim, embed_dim), jnp.float32) * std
    w1 = jax.random.normal(ks[4], (embed_dim, feedforward_dim), jnp.float32) * std
    w2 = jax.random.normal(ks[5], (feedforward_dim, embed_dim), jnp.float32) * std
    bq = jnp.zeros((1, embed_dim), jnp.float32)
    bk = jnp.full((1, embed_dim), 0.01, jnp.float32)
    bv = jnp.full((1, embed_dim), -0.01, jnp.float32)
    return dict(
        wqkv=jnp.concatenate([wq, wk, wv], axis=1),          # (E, 3E)
        bqkv=jnp.concatenate([bq, bk, bv], axis=1),          # (1, 3E)
        wo=wo, bo=jnp.zeros((1, embed_dim), jnp.float32),
        w1=w1, b1=jnp.full((1, feedforward_dim), 0.02, jnp.float32),
        w2=w2, b2=jnp.zeros((1, embed_dim), jnp.float32),
        g1=jnp.ones((1, embed_dim), jnp.float32),
        be1=jnp.zeros((1, embed_dim), jnp.float32),
        g2=jnp.ones((1, embed_dim), jnp.float32),
        be2=jnp.zeros((1, embed_dim), jnp.float32),
    )


def init_params(key, num_layers, embed_dim, feedforward_dim):
    keys = jax.random.split(key, num_layers)
    per_layer = [_init_layer_params(k, embed_dim, feedforward_dim) for k in keys]
    return {name: jnp.stack([p[name] for p in per_layer], axis=0)
            for name in per_layer[0]}


# ----------------------------------------------------------------------------
# Pure-JAX reference (same math, exact softmax, raw unscaled weights).
# ----------------------------------------------------------------------------
def _reference(x_sbe, params, num_heads):
    x = jnp.transpose(x_sbe, (1, 0, 2))      # (B, S, E)
    B, S, E = x.shape
    L = params["wqkv"].shape[0]
    Dh = E // num_heads

    def ln(z, g, b):
        m = z.mean(-1, keepdims=True)
        var = ((z - m) ** 2).mean(-1, keepdims=True)
        return (z - m) / jnp.sqrt(var + 1e-5) * g + b

    for l in range(L):
        wqkv, bqkv = params["wqkv"][l], params["bqkv"][l][0]
        wo, bo = params["wo"][l], params["bo"][l][0]
        w1, b1 = params["w1"][l], params["b1"][l][0]
        w2, b2 = params["w2"][l], params["b2"][l][0]
        g1, be1 = params["g1"][l][0], params["be1"][l][0]
        g2, be2 = params["g2"][l][0], params["be2"][l][0]

        def one(xb):
            qkv = xb @ wqkv + bqkv
            q, k, v = qkv[:, :E], qkv[:, E:2 * E], qkv[:, 2 * E:]
            outs = []
            for h in range(num_heads):
                sl = slice(h * Dh, (h + 1) * Dh)
                s = (q[:, sl] @ k[:, sl].T) / math.sqrt(Dh)
                pr = jax.nn.softmax(s, axis=-1)
                outs.append(pr @ v[:, sl])
            attn = jnp.concatenate(outs, -1) @ wo + bo
            y = ln(xb + attn, g1, be1)
            ff = jnp.maximum(y @ w1 + b1, 0.0) @ w2 + b2
            return ln(y + ff, g2, be2)

        x = jax.vmap(one)(x)
    return jnp.transpose(x, (1, 0, 2))


# ----------------------------------------------------------------------------
if __name__ == "__main__":
    # Small shapes consistent with the module's forward.
    SEQ, BATCH, EMBED = 8, 2, 32
    NUM_HEADS, FF_DIM, NUM_ENCODERS = 4, 64, 2

    key = jax.random.PRNGKey(0)
    kx, kp = jax.random.split(key)

    x = jax.random.normal(kx, (SEQ, BATCH, EMBED), jnp.float32)
    params = init_params(kp, NUM_ENCODERS, EMBED, FF_DIM)

    # f32 path: exact softmax + f32 matmuls -> tight parity with the reference.
    out = sequential_transformer_encoder(x, params, num_heads=NUM_HEADS)
    out = jax.block_until_ready(out)
    ref = _reference(x, params, NUM_HEADS)
    assert out.shape == (SEQ, BATCH, EMBED)
    assert jnp.allclose(out, ref, atol=5e-4, rtol=5e-4), "mismatch vs reference"

    # bf16 MXU path (perf configuration): check it compiles, runs and is finite.
    out_bf16 = sequential_transformer_encoder(x, params, num_heads=NUM_HEADS,
                                              compute_dtype=jnp.bfloat16)
    out_bf16 = jax.block_until_ready(out_bf16)
    assert out_bf16.shape == (SEQ, BATCH, EMBED)
    assert bool(jnp.all(jnp.isfinite(out_bf16)))

    print("KERNEL_OK")
</pallas_src>

<mosaic_0001>
module attributes {stable_mosaic.version = 11 : i64} {
  func.func @kernel(%arg0: i32, %arg1: memref<16x32xf32, #tpu.memory_space<vmem>>, %arg2: memref<1x32x96xf32, #tpu.memory_space<vmem>>, %arg3: memref<1x1x96xf32, #tpu.memory_space<vmem>>, %arg4: memref<1x32x32xf32, #tpu.memory_space<vmem>>, %arg5: memref<1x1x32xf32, #tpu.memory_space<vmem>>, %arg6: memref<1x32x64xf32, #tpu.memory_space<vmem>>, %arg7: memref<1x1x64xf32, #tpu.memory_space<vmem>>, %arg8: memref<1x64x32xf32, #tpu.memory_space<vmem>>, %arg9: memref<1x1x32xf32, #tpu.memory_space<vmem>>, %arg10: memref<1x1x32xf32, #tpu.memory_space<vmem>>, %arg11: memref<1x1x32xf32, #tpu.memory_space<vmem>>, %arg12: memref<1x1x32xf32, #tpu.memory_space<vmem>>, %arg13: memref<1x1x32xf32, #tpu.memory_space<vmem>>, %arg14: memref<16x32xf32, #tpu.memory_space<vmem>>, %arg15: memref<16x32xf32, #tpu.memory_space<vmem>>) attributes {dimension_semantics = [#tpu.dimension_semantics<arbitrary>], iteration_bounds = array<i64: 2>, scalar_prefetch = 0 : i64, scratch_operands = 1 : i64, tpu.core_type = #tpu.core_type<tc>, window_params = [{pipeline_mode = #tpu.pipeline_mode<synchronous>, transform_indices = @transform_0, window_bounds = array<i64: 16, 32>}, {transform_indices = @transform_1, window_bounds = array<i64: 1, 32, 96>}, {transform_indices = @transform_2, window_bounds = array<i64: 1, 1, 96>}, {transform_indices = @transform_3, window_bounds = array<i64: 1, 32, 32>}, {transform_indices = @transform_4, window_bounds = array<i64: 1, 1, 32>}, {transform_indices = @transform_5, window_bounds = array<i64: 1, 32, 64>}, {transform_indices = @transform_6, window_bounds = array<i64: 1, 1, 64>}, {transform_indices = @transform_7, window_bounds = array<i64: 1, 64, 32>}, {transform_indices = @transform_8, window_bounds = array<i64: 1, 1, 32>}, {transform_indices = @transform_9, window_bounds = array<i64: 1, 1, 32>}, {transform_indices = @transform_10, window_bounds = array<i64: 1, 1, 32>}, {transform_indices = @transform_11, window_bounds = array<i64: 1, 1, 32>}, {transform_indices = @transform_12, window_bounds = array<i64: 1, 1, 32>}, {pipeline_mode = #tpu.pipeline_mode<synchronous>, transform_indices = @transform_13, window_bounds = array<i64: 16, 32>}]} {
    %c0_i32 = arith.constant 0 : i32
    %0 = arith.cmpi eq, %arg0, %c0_i32 : i32
    %1 = arith.extui %0 : i1 to i32
    %c0_i32_0 = arith.constant 0 : i32
    %2 = arith.cmpi ne, %1, %c0_i32_0 : i32
    scf.if %2 {
      %c0_59 = arith.constant 0 : index
      %c0_60 = arith.constant 0 : index
      %118 = vector.load %arg1[%c0_59, %c0_60] : memref<16x32xf32, #tpu.memory_space<vmem>>, vector<16x32xf32>
      %c0_61 = arith.constant 0 : index
      %c0_62 = arith.constant 0 : index
      %119 = vector.load %arg15[%c0_61, %c0_62] : memref<16x32xf32, #tpu.memory_space<vmem>>, vector<16x32xf32>
      tpu.vector_store %arg15[%c0_61, %c0_62], %118 {strides = array<i32>} : memref<16x32xf32, #tpu.memory_space<vmem>>, vector<16x32xf32>,
    } else {
    }
    %c0 = arith.constant 0 : index
    %c0_1 = arith.constant 0 : index
    %3 = vector.load %arg15[%c0, %c0_1] : memref<16x32xf32, #tpu.memory_space<vmem>>, vector<16x32xf32>
    %c0_2 = arith.constant 0 : index
    %c0_3 = arith.constant 0 : index
    %c0_4 = arith.constant 0 : index
    %4 = vector.load %arg2[%c0_2, %c0_3, %c0_4] : memref<1x32x96xf32, #tpu.memory_space<vmem>>, vector<1x32x96xf32>
    %5 = vector.shape_cast %4 : vector<1x32x96xf32> to vector<32x96xf32>
    %c0_5 = arith.constant 0 : index
    %c0_6 = arith.constant 0 : index
    %c0_7 = arith.constant 0 : index
    %6 = vector.load %arg3[%c0_5, %c0_6, %c0_7] : memref<1x1x96xf32, #tpu.memory_space<vmem>>, vector<1x1x96xf32>
    %7 = vector.shape_cast %6 : vector<1x1x96xf32> to vector<1x96xf32>
    %c0_8 = arith.constant 0 : index
    %c0_9 = arith.constant 0 : index
    %c0_10 = arith.constant 0 : index
    %8 = vector.load %arg4[%c0_8, %c0_9, %c0_10] : memref<1x32x32xf32, #tpu.memory_space<vmem>>, vector<1x32x32xf32>
    %9 = vector.shape_cast %8 : vector<1x32x32xf32> to vector<32x32xf32>
    %c0_11 = arith.constant 0 : index
    %c0_12 = arith.constant 0 : index
    %c0_13 = arith.constant 0 : index
    %10 = vector.load %arg5[%c0_11, %c0_12, %c0_13] : memref<1x1x32xf32, #tpu.memory_space<vmem>>, vector<1x1x32xf32>
    %11 = vector.shape_cast %10 : vector<1x1x32xf32> to vector<1x32xf32>
    %c0_14 = arith.constant 0 : index
    %c0_15 = arith.constant 0 : index
    %c0_16 = arith.constant 0 : index
    %12 = vector.load %arg6[%c0_14, %c0_15, %c0_16] : memref<1x32x64xf32, #tpu.memory_space<vmem>>, vector<1x32x64xf32>
    %13 = vector.shape_cast %12 : vector<1x32x64xf32> to vector<32x64xf32>
    %c0_17 = arith.constant 0 : index
    %c0_18 = arith.constant 0 : index
    %c0_19 = arith.constant 0 : index
    %14 = vector.load %arg7[%c0_17, %c0_18, %c0_19] : memref<1x1x64xf32, #tpu.memory_space<vmem>>, vector<1x1x64xf32>
    %15 = vector.shape_cast %14 : vector<1x1x64xf32> to vector<1x64xf32>
    %c0_20 = arith.constant 0 : index
    %c0_21 = arith.constant 0 : index
    %c0_22 = arith.constant 0 : index
    %16 = vector.load %arg8[%c0_20, %c0_21, %c0_22] : memref<1x64x32xf32, #tpu.memory_space<vmem>>, vector<1x64x32xf32>
    %17 = vector.shape_cast %16 : vector<1x64x32xf32> to vector<64x32xf32>
    %c0_23 = arith.constant 0 : index
    %c0_24 = arith.constant 0 : index
    %c0_25 = arith.constant 0 : index
    %18 = vector.load %arg9[%c0_23, %c0_24, %c0_25] : memref<1x1x32xf32, #tpu.memory_space<vmem>>, vector<1x1x32xf32>
    %19 = vector.shape_cast %18 : vector<1x1x32xf32> to vector<1x32xf32>
    %c0_26 = arith.constant 0 : index
    %c0_27 = arith.constant 0 : index
    %c0_28 = arith.constant 0 : index
    %20 = vector.load %arg10[%c0_26, %c0_27, %c0_28] : memref<1x1x32xf32, #tpu.memory_space<vmem>>, vector<1x1x32xf32>
    %21 = vector.shape_cast %20 : vector<1x1x32xf32> to vector<1x32xf32>
    %c0_29 = arith.constant 0 : index
    %c0_30 = arith.constant 0 : index
    %c0_31 = arith.constant 0 : index
    %22 = vector.load %arg11[%c0_29, %c0_30, %c0_31] : memref<1x1x32xf32, #tpu.memory_space<vmem>>, vector<1x1x32xf32>
    %23 = vector.shape_cast %22 : vector<1x1x32xf32> to vector<1x32xf32>
    %c0_32 = arith.constant 0 : index
    %c0_33 = arith.constant 0 : index
    %c0_34 = arith.constant 0 : index
    %24 = vector.load %arg12[%c0_32, %c0_33, %c0_34] : memref<1x1x32xf32, #tpu.memory_space<vmem>>, vector<1x1x32xf32>
    %25 = vector.shape_cast %24 : vector<1x1x32xf32> to vector<1x32xf32>
    %c0_35 = arith.constant 0 : index
    %c0_36 = arith.constant 0 : index
    %c0_37 = arith.constant 0 : index
    %26 = vector.load %arg13[%c0_35, %c0_36, %c0_37] : memref<1x1x32xf32, #tpu.memory_space<vmem>>, vector<1x1x32xf32>
    %27 = vector.shape_cast %26 : vector<1x1x32xf32> to vector<1x32xf32>
    %cst = arith.constant dense<0.000000e+00> : vector<16x96xf32>
    %28 = tpu.matmul %3, %5, %cst {dimension_numbers = #tpu.dot_dimension_numbers<[1], [0], [0], [1], [0, 0, 1, 1], [], []>} : vector<16x32xf32>, vector<32x96xf32>, vector<16x96xf32> -> vector<16x96xf32>
    %29 = vector.broadcast %7 : vector<1x96xf32> to vector<16x96xf32>
    %30 = arith.addf %28, %29 : vector<16x96xf32>
    %31 = vector.extract_strided_slice %30 {offsets = [0, 0], sizes = [16, 32], strides = [1, 1]} : vector<16x96xf32> to vector<16x32xf32>
    %32 = vector.shape_cast %31 : vector<16x32xf32> to vector<8x2x4x8xf32>
    %33 = tpu.transpose %32, [1, 2, 0, 3] : vector<8x2x4x8xf32> -> vector<2x4x8x8xf32>
    %34 = vector.shape_cast %33 : vector<2x4x8x8xf32> to vector<8x8x8xf32>
    %35 = vector.extract_strided_slice %30 {offsets = [0, 32], sizes = [16, 32], strides = [1, 1]} : vector<16x96xf32> to vector<16x32xf32>
    %36 = vector.shape_cast %35 : vector<16x32xf32> to vector<8x2x4x8xf32>
    %37 = tpu.transpose %36, [1, 2, 0, 3] : vector<8x2x4x8xf32> -> vector<2x4x8x8xf32>
    %38 = vector.shape_cast %37 : vector<2x4x8x8xf32> to vector<8x8x8xf32>
    %39 = vector.extract_strided_slice %30 {offsets = [0, 64], sizes = [16, 32], strides = [1, 1]} : vector<16x96xf32> to vector<16x32xf32>
    %40 = vector.shape_cast %39 : vector<16x32xf32> to vector<8x2x4x8xf32>
    %41 = tpu.transpose %40, [1, 2, 0, 3] : vector<8x2x4x8xf32> -> vector<2x4x8x8xf32>
    %42 = vector.shape_cast %41 : vector<2x4x8x8xf32> to vector<8x8x8xf32>
    "tpu.trace_start"() <{level = 10 : i32, message = "gqd,gkd->gqk"}> : () -> ()
    %cst_38 = arith.constant dense<0.000000e+00> : vector<8x8x8xf32>
    %43 = tpu.matmul %34, %38, %cst_38 {dimension_numbers = #tpu.dot_dimension_numbers<[2], [2], [1], [1], [0, 0, 0, 1, 1, 1], [0], [0]>} : vector<8x8x8xf32>, vector<8x8x8xf32>, vector<8x8x8xf32> -> vector<8x8x8xf32>
    "tpu.trace_stop"() : () -> ()
    %cst_39 = arith.constant dense<0xFF800000> : vector<8x8xf32>
    %44 = vector.multi_reduction <maximumf>, %43, %cst_39 [2] : vector<8x8x8xf32> to vector<8x8xf32>
    %45 = vector.shape_cast %44 : vector<8x8xf32> to vector<8x8x1xf32>
    %46 = vector.broadcast %45 : vector<8x8x1xf32> to vector<8x8x8xf32>
    %47 = arith.subf %43, %46 : vector<8x8x8xf32>
    %48 = math.exp %47 : vector<8x8x8xf32>
    %cst_40 = arith.constant dense<0.000000e+00> : vector<8x8xf32>
    %49 = vector.multi_reduction <add>, %48, %cst_40 [2] : vector<8x8x8xf32> to vector<8x8xf32>
    %50 = vector.shape_cast %49 : vector<8x8xf32> to vector<8x8x1xf32>
    %51 = vector.broadcast %50 : vector<8x8x1xf32> to vector<8x8x8xf32>
    %52 = arith.divf %48, %51 : vector<8x8x8xf32>
    "tpu.trace_start"() <{level = 10 : i32, message = "gqk,gkd->gqd"}> : () -> ()
    %cst_41 = arith.constant dense<0.000000e+00> : vector<8x8x8xf32>
    %53 = tpu.matmul %52, %42, %cst_41 {dimension_numbers = #tpu.dot_dimension_numbers<[2], [1], [1], [2], [0, 0, 0, 1, 1, 2], [0], [0]>} : vector<8x8x8xf32>, vector<8x8x8xf32>, vector<8x8x8xf32> -> vector<8x8x8xf32>
    "tpu.trace_stop"() : () -> ()
    %54 = vector.shape_cast %53 : vector<8x8x8xf32> to vector<2x4x8x8xf32>
    %55 = tpu.transpose %54, [2, 0, 1, 3] : vector<2x4x8x8xf32> -> vector<8x2x4x8xf32>
    %56 = vector.shape_cast %55 : vector<8x2x4x8xf32> to vector<16x32xf32>
    %cst_42 = arith.constant dense<0.000000e+00> : vector<16x32xf32>
    %57 = tpu.matmul %56, %9, %cst_42 {dimension_numbers = #tpu.dot_dimension_numbers<[1], [0], [0], [1], [0, 0, 1, 1], [], []>} : vector<16x32xf32>, vector<32x32xf32>, vector<16x32xf32> -> vector<16x32xf32>
    %58 = vector.broadcast %11 : vector<1x32xf32> to vector<16x32xf32>
    %59 = arith.addf %57, %58 : vector<16x32xf32>
    %60 = arith.addf %3, %59 : vector<16x32xf32>
    %cst_43 = arith.constant dense<0.000000e+00> : vector<16xf32>
    %61 = vector.multi_reduction <add>, %60, %cst_43 [1] : vector<16x32xf32> to vector<16xf32>
    %62 = vector.shape_cast %61 : vector<16xf32> to vector<16x1xf32>
    %cst_44 = arith.constant 3.200000e+01 : f32
    %63 = vector.broadcast %cst_44 : f32 to vector<16x1xf32>
    %64 = arith.divf %62, %63 : vector<16x1xf32>
    %65 = vector.broadcast %64 : vector<16x1xf32> to vector<16x32xf32>
    %66 = arith.subf %60, %65 : vector<16x32xf32>
    %67 = arith.mulf %66, %66 : vector<16x32xf32>
    %cst_45 = arith.constant dense<0.000000e+00> : vector<16xf32>
    %68 = vector.multi_reduction <add>, %67, %cst_45 [1] : vector<16x32xf32> to vector<16xf32>
    %69 = vector.shape_cast %68 : vector<16xf32> to vector<16x1xf32>
    %cst_46 = arith.constant 3.200000e+01 : f32
    %70 = vector.broadcast %cst_46 : f32 to vector<16x1xf32>
    %71 = arith.divf %69, %70 : vector<16x1xf32>
    %cst_47 = arith.constant 9.99999974E-6 : f32
    %72 = vector.broadcast %cst_47 : f32 to vector<16x1xf32>
    %73 = arith.addf %71, %72 : vector<16x1xf32>
    %74 = math.rsqrt %73 : vector<16x1xf32>
    %75 = vector.broadcast %64 : vector<16x1xf32> to vector<16x32xf32>
    %76 = arith.subf %60, %75 : vector<16x32xf32>
    %77 = vector.broadcast %74 : vector<16x1xf32> to vector<16x32xf32>
    %78 = arith.mulf %76, %77 : vector<16x32xf32>
    %79 = vector.broadcast %21 : vector<1x32xf32> to vector<16x32xf32>
    %80 = arith.mulf %78, %79 : vector<16x32xf32>
    %81 = vector.broadcast %23 : vector<1x32xf32> to vector<16x32xf32>
    %82 = arith.addf %80, %81 : vector<16x32xf32>
    %cst_48 = arith.constant dense<0.000000e+00> : vector<16x64xf32>
    %83 = tpu.matmul %82, %13, %cst_48 {dimension_numbers = #tpu.dot_dimension_numbers<[1], [0], [0], [1], [0, 0, 1, 1], [], []>} : vector<16x32xf32>, vector<32x64xf32>, vector<16x64xf32> -> vector<16x64xf32>
    %84 = vector.broadcast %15 : vector<1x64xf32> to vector<16x64xf32>
    %85 = arith.addf %83, %84 : vector<16x64xf32>
    %cst_49 = arith.constant 0.000000e+00 : f32
    %86 = vector.broadcast %cst_49 : f32 to vector<16x64xf32>
    %87 = arith.maximumf %85, %86 : vector<16x64xf32>
    %cst_50 = arith.constant dense<0.000000e+00> : vector<16x32xf32>
    %88 = tpu.matmul %87, %17, %cst_50 {dimension_numbers = #tpu.dot_dimension_numbers<[1], [0], [0], [1], [0, 0, 1, 1], [], []>} : vector<16x64xf32>, vector<64x32xf32>, vector<16x32xf32> -> vector<16x32xf32>
    %89 = vector.broadcast %19 : vector<1x32xf32> to vector<16x32xf32>
    %90 = arith.addf %88, %89 : vector<16x32xf32>
    %91 = arith.addf %82, %90 : vector<16x32xf32>
    %cst_51 = arith.constant dense<0.000000e+00> : vector<16xf32>
    %92 = vector.multi_reduction <add>, %91, %cst_51 [1] : vector<16x32xf32> to vector<16xf32>
    %93 = vector.shape_cast %92 : vector<16xf32> to vector<16x1xf32>
    %cst_52 = arith.constant 3.200000e+01 : f32
    %94 = vector.broadcast %cst_52 : f32 to vector<16x1xf32>
    %95 = arith.divf %93, %94 : vector<16x1xf32>
    %96 = vector.broadcast %95 : vector<16x1xf32> to vector<16x32xf32>
    %97 = arith.subf %91, %96 : vector<16x32xf32>
    %98 = arith.mulf %97, %97 : vector<16x32xf32>
    %cst_53 = arith.constant dense<0.000000e+00> : vector<16xf32>
    %99 = vector.multi_reduction <add>, %98, %cst_53 [1] : vector<16x32xf32> to vector<16xf32>
    %100 = vector.shape_cast %99 : vector<16xf32> to vector<16x1xf32>
    %cst_54 = arith.constant 3.200000e+01 : f32
    %101 = vector.broadcast %cst_54 : f32 to vector<16x1xf32>
    %102 = arith.divf %100, %101 : vector<16x1xf32>
    %cst_55 = arith.constant 9.99999974E-6 : f32
    %103 = vector.broadcast %cst_55 : f32 to vector<16x1xf32>
    %104 = arith.addf %102, %103 : vector<16x1xf32>
    %105 = math.rsqrt %104 : vector<16x1xf32>
    %106 = vector.broadcast %95 : vector<16x1xf32> to vector<16x32xf32>
    %107 = arith.subf %91, %106 : vector<16x32xf32>
    %108 = vector.broadcast %105 : vector<16x1xf32> to vector<16x32xf32>
    %109 = arith.mulf %107, %108 : vector<16x32xf32>
    %110 = vector.broadcast %25 : vector<1x32xf32> to vector<16x32xf32>
    %111 = arith.mulf %109, %110 : vector<16x32xf32>
    %112 = vector.broadcast %27 : vector<1x32xf32> to vector<16x32xf32>
    %113 = arith.addf %111, %112 : vector<16x32xf32>
    %c0_56 = arith.constant 0 : index
    %c0_57 = arith.constant 0 : index
    %114 = vector.load %arg15[%c0_56, %c0_57] : memref<16x32xf32, #tpu.memory_space<vmem>>, vector<16x32xf32>
    tpu.vector_store %arg15[%c0_56, %c0_57], %113 {strides = array<i32>} : memref<16x32xf32, #tpu.memory_space<vmem>>, vector<16x32xf32>,
    %c1_i32 = arith.constant 1 : i32
    %115 = arith.cmpi eq, %arg0, %c1_i32 : i32
    %116 = arith.extui %115 : i1 to i32
    %c0_i32_58 = arith.constant 0 : i32
    %117 = arith.cmpi ne, %116, %c0_i32_58 : i32
    scf.if %117 {
      %c0_59 = arith.constant 0 : index
      %c0_60 = arith.constant 0 : index
      %118 = vector.load %arg14[%c0_59, %c0_60] : memref<16x32xf32, #tpu.memory_space<vmem>>, vector<16x32xf32>
      tpu.vector_store %arg14[%c0_59, %c0_60], %113 {strides = array<i32>} : memref<16x32xf32, #tpu.memory_space<vmem>>, vector<16x32xf32>,
    } else {
    }
    return
  }
  func.func @transform_0(%arg0: i32) -> (i32, i32) {
    %c0_i32 = arith.constant 0 : i32
    %c0_i32_0 = arith.constant 0 : i32
    %c0_i32_1 = arith.constant 0 : i32
    return %c0_i32, %c0_i32_0 : i32, i32
  }
  func.func @transform_1(%arg0: i32) -> (i32, i32, i32) {
    %c0_i32 = arith.constant 0 : i32
    %c0_i32_0 = arith.constant 0 : i32
    %c0_i32_1 = arith.constant 0 : i32
    return %arg0, %c0_i32, %c0_i32_0 : i32, i32, i32
  }
  func.func @transform_2(%arg0: i32) -> (i32, i32, i32) {
    %c0_i32 = arith.constant 0 : i32
    %c0_i32_0 = arith.constant 0 : i32
    %c0_i32_1 = arith.constant 0 : i32
    return %arg0, %c0_i32, %c0_i32_0 : i32, i32, i32
  }
  func.func @transform_3(%arg0: i32) -> (i32, i32, i32) {
    %c0_i32 = arith.constant 0 : i32
    %c0_i32_0 = arith.constant 0 : i32
    %c0_i32_1 = arith.constant 0 : i32
    return %arg0, %c0_i32, %c0_i32_0 : i32, i32, i32
  }
  func.func @transform_4(%arg0: i32) -> (i32, i32, i32) {
    %c0_i32 = arith.constant 0 : i32
    %c0_i32_0 = arith.constant 0 : i32
    %c0_i32_1 = arith.constant 0 : i32
    return %arg0, %c0_i32, %c0_i32_0 : i32, i32, i32
  }
  func.func @transform_5(%arg0: i32) -> (i32, i32, i32) {
    %c0_i32 = arith.constant 0 : i32
    %c0_i32_0 = arith.constant 0 : i32
    %c0_i32_1 = arith.constant 0 : i32
    return %arg0, %c0_i32, %c0_i32_0 : i32, i32, i32
  }
  func.func @transform_6(%arg0: i32) -> (i32, i32, i32) {
    %c0_i32 = arith.constant 0 : i32
    %c0_i32_0 = arith.constant 0 : i32
    %c0_i32_1 = arith.constant 0 : i32
    return %arg0, %c0_i32, %c0_i32_0 : i32, i32, i32
  }
  func.func @transform_7(%arg0: i32) -> (i32, i32, i32) {
    %c0_i32 = arith.constant 0 : i32
    %c0_i32_0 = arith.constant 0 : i32
    %c0_i32_1 = arith.constant 0 : i32
    return %arg0, %c0_i32, %c0_i32_0 : i32, i32, i32
  }
  func.func @transform_8(%arg0: i32) -> (i32, i32, i32) {
    %c0_i32 = arith.constant 0 : i32
    %c0_i32_0 = arith.constant 0 : i32
    %c0_i32_1 = arith.constant 0 : i32
    return %arg0, %c0_i32, %c0_i32_0 : i32, i32, i32
  }
  func.func @transform_9(%arg0: i32) -> (i32, i32, i32) {
    %c0_i32 = arith.constant 0 : i32
    %c0_i32_0 = arith.constant 0 : i32
    %c0_i32_1 = arith.constant 0 : i32
    return %arg0, %c0_i32, %c0_i32_0 : i32, i32, i32
  }
  func.func @transform_10(%arg0: i32) -> (i32, i32, i32) {
    %c0_i32 = arith.constant 0 : i32
    %c0_i32_0 = arith.constant 0 : i32
    %c0_i32_1 = arith.constant 0 : i32
    return %arg0, %c0_i32, %c0_i32_0 : i32, i32, i32
  }
  func.func @transform_11(%arg0: i32) -> (i32, i32, i32) {
    %c0_i32 = arith.constant 0 : i32
    %c0_i32_0 = arith.constant 0 : i32
    %c0_i32_1 = arith.constant 0 : i32
    return %arg0, %c0_i32, %c0_i32_0 : i32, i32, i32
  }
  func.func @transform_12(%arg0: i32) -> (i32, i32, i32) {
    %c0_i32 = arith.constant 0 : i32
    %c0_i32_0 = arith.constant 0 : i32
    %c0_i32_1 = arith.constant 0 : i32
    return %arg0, %c0_i32, %c0_i32_0 : i32, i32, i32
  }
  func.func @transform_13(%arg0: i32) -> (i32, i32) {
    %c0_i32 = arith.constant 0 : i32
    %c0_i32_0 = arith.constant 0 : i32
    %c0_i32_1 = arith.constant 0 : i32
    return %c0_i32, %c0_i32_0 : i32, i32
  }
}

</mosaic_0001>

<bundles_post_ra>
// kernel: sequential_transformer_encoder.1
= control target key start
LH: loop header
LB: loop body
LE: loop exit
PB: predicated region body
PF: predicated region fallthrough
CT: control target
= control target key end

     0   :  { %s4723_s0 = inlined_call_operand.vmem [shape: f32[16,32], index: 0, kind: input, shape index: {}]   ;;  %s4724_s1 = inlined_call_operand.vmem [shape: f32[2,32,96], index: 1, kind: input, shape index: {}]   ;;  %s4725_s2 = inlined_call_operand.vmem [shape: f32[2,1,96], index: 2, kind: input, shape index: {}]   ;;  %s4726_s3 = inlined_call_operand.vmem [shape: f32[2,32,32], index: 3, kind: input, shape index: {}]   ;;  %s4727_s4 = inlined_call_operand.vmem [shape: f32[2,1,32], index: 4, kind: input, shape index: {}]   ;;  %s4728_s5 = inlined_call_operand.vmem [shape: f32[2,32,64], index: 5, kind: input, shape index: {}]   ;;  %s4729_s6 = inlined_call_operand.vmem [shape: f32[2,1,64], index: 6, kind: input, shape index: {}]   ;;  %s4730_s7 = inlined_call_operand.vmem [shape: f32[2,64,32], index: 7, kind: input, shape index: {}]   ;;  %s4731_s8 = inlined_call_operand.vmem [shape: f32[2,1,32], index: 8, kind: input, shape index: {}]   ;;  %s4732_s9 = inlined_call_operand.vmem [shape: f32[2,1,32], index: 9, kind: input, shape index: {}]   ;;  %s4733_s10 = inlined_call_operand.vmem [shape: f32[2,1,32], index: 10, kind: input, shape index: {}]   ;;  %s4734_s11 = inlined_call_operand.vmem [shape: f32[2,1,32], index: 11, kind: input, shape index: {}]   ;;  %s4735_s12 = inlined_call_operand.vmem [shape: f32[2,1,32], index: 12, kind: input, shape index: {}]   ;;  %s4736_s13 = inlined_call_operand.hbm [shape: f32[16,32], index: 13, kind: output, shape index: {}]  }
   0x1   :  { %4739 = sst [smem:[#allocation7_spill]] %s4724_s1 }
   0x2   :  { %4740 = sst [smem:[#allocation8_spill]] %s4726_s3 }
   0x3   :  { %4741 = sst [smem:[#allocation9_spill]] %s4728_s5 }
   0x4   :  { %4742 = sst [smem:[#allocation10_spill]] %s4729_s6 }
   0x5   :  { %4743 = sst [smem:[#allocation11_spill]] %s4736_s13 }
   0x6   :  { %18 = vsyncpa [#allocation4], 0  ;;  %s4210_s25 = smov 0  }
   0x7 LB: > { %4744 = sst [smem:[#allocation6_spill]] %s4124_s25  ;;  %s4216_s26 = sadd.s32 4294967295, %s4124_s25   ;;  %s4124_s25 = sphi %s4210_s25, %s24_s25  }
   0x8   : > { %p3715_p0 = scmp.ge.s32.totalorder %s4124_s25, 1  ;;  %p477_p1 = scmp.lt.s32.totalorder %s4124_s25, 3 }
   0xa   : > { %p478_p2 = pnand %p3715_p0, %p477_p1 }
   0xb   : > { %p555_p3 = scmp.lt.s32.totalorder (!%p478_p2), %s4216_s26, 1  ;;  %s4745_s1 = sld [smem:[#allocation7_spill]] (!%p478_p2) }
   0xc   : > { %481 = sbr.rel (%p478_p2) target bundleno = 2738 (0xab2), region = 72  ;;  %s4746_s3 = sld [smem:[#allocation8_spill]] (!%p478_p2) }
   0xd   : > { %s4747_s5 = sld [smem:[#allocation9_spill]] (!%p478_p2)  ;;  %p3724_p4 = scmp.ne.s32.totalorder (!%p478_p2), %s4216_s26, 0 }
  0x13   : > { %s4222_s27 = scalar_select %p555_p3, %s4216_s26, 1 }
  0x14   : > { %602 = sbr.rel (%p3724_p4) target bundleno = 27 (0x1b), region = 76  ;;  %v603_v0 = vld [vmem:[%s4723_s0] sm:$0xff] (!%p3724_p4)  ;;  %vm605_vm0 = vcmask (!%p3724_p4), 261120   ;;  %v604_v1 = vld [vmem:[%s4723_s0 + $0x8] sm:$0xff] (!%p3724_p4) }
  0x15   : > { %s3782_s28 = sshll.u32 %s4222_s27, 5  ;;  %s3785_s15 = sshll.u32 %s4222_s27, 6  ;;  %606 = vst.msk [vmem:[#allocation2] sm:$0xff] (!%p3724_p4), %vm605_vm0, %v603_v0  ;;  %607 = vst.msk [vmem:[#allocation2 + $0x8] sm:$0xff] (!%p3724_p4), %vm605_vm0, %v604_v1 }
  0x16   : > { %s559_s17 = scalar_lea.vmem %s4745_s1, %s3782_s28  ;;  %s4235_s20 = scalar_lea.vmem %s4746_s3, %s3782_s28 }
  0x17   : > { %s4244_s13 = scalar_lea.vmem %s4747_s5, %s3782_s28  ;;  %s4254_s18 = scalar_lea.vmem %s4730_s7, %s3785_s15 }
  0x18   : > { %s586_s21 = scalar_lea.vmem %s4731_s8, %s4222_s27  ;;  %s589_s25 = scalar_lea.vmem %s4732_s9, %s4222_s27 }
  0x19   : > { %s592_s5 = scalar_lea.vmem %s4733_s10, %s4222_s27  ;;  %s595_s14 = scalar_lea.vmem %s4734_s11, %s4222_s27 }
  0x1a   : > { %s598_s15 = scalar_lea.vmem %s4735_s12, %s4222_s27 }
  0x1b PF: > { %v610_v2 = vld [vmem:[%s559_s17] sm:$0xff]  ;;  %v611_v3 = vld [vmem:[%s559_s17 + $0x8] sm:$0xff]  ;;  %v612_v4 = vld [vmem:[%s559_s17 + $0x10] sm:$0xff]  ;;  %vm644_vm1 = vcmask 261120   ;;  %s4749_s28 = scalar_lea.vmem %s4725_s2, %s4222_s27  ;;  %s4127_s24 = smov 120   ;;  %v4130_v21 = vmov 0.0   ;;  %v751_v24 = vlaneseq }
  0x1c   : > { %v3978_v5 = vpack.c.bf16 %v611_v3, %v610_v2  ;;  %v613_v6 = vld [vmem:[%s559_s17 + $0x18] sm:$0xff]  ;;  %v608_v7 = vld [vmem:[#allocation2] sm:$0xff]  ;;  %v609_v9 = vld [vmem:[#allocation2 + $0x8] sm:$0xff]  ;;  %s4126_s17 = smov 112   ;;  %s4128_s29 = smov 104   ;;  %3867 = vmatprep.subr.mxu0 %v4130_v21  ;;  %vm4131_vm2 = vmmov 0  }
  0x1d   : > { %v3982_v8 = vpack.c.bf16 %v613_v6, %v612_v4  ;;  %3854 = vmatprep.mubr.msk.f32.mxu1 %vm644_vm1, %v608_v7  ;;  %v3725_v10 = vld [vmem:[%s4749_s28] ss:$0 sm:$0xff]  ;;  %s4129_s30 = smov 96   ;;  %3869 = vmatprep.mubr.msk.f32.mxu0 %vm4131_vm2, %v4130_v21  ;;  %v4132_v22 = vmov 1983009808   ;;  %v752_v26 = vshrl.u32 %v751_v24, 7  ;;  %s4750_s6 = scalar_lea.vmem %s4727_s4, %s4222_s27 }
  0x1e   : > { %3979 = vmatprep.subr.bf16.mxu1 %v3978_v5  ;;  %v749_v23 = vunpack.c.l.s4 %v4132_v22  ;;  %v4133_v27 = vmov 1934713408   ;;  %vm1610_vm3 = vcmask 64512   ;;  %s4134_s1 = smov 64   ;;  %s4135_s3 = smov 8   ;;  %vm3189_vm4 = vcmask 130048  }
  0x1f   : > { %3981 = vmatpush3.bf16.msra.mxu1 %v3978_v5  ;;  %v781_v28 = vunpack.c.l.s4 %v4133_v27  ;;  %s4136_s16 = smov 24   ;;  %s4137_s23 = smov 16   ;;  %vm3192_vm5 = vcmask 195584   ;;  %vm3422_vm6 = vcmask 523264  }
  0x20   : > { %3983 = vmatprep.subr.bf16.mxu1 %v3982_v8  ;;  %v750_v25 = vunpack.c.0.s8 %v749_v23  ;;  %p3777_p5 = scmp.ne.s32.totalorder %s4216_s26, 1 }
  0x21   : > { %v782_v38 = vunpack.c.0.s8 %v781_v28 }
  0x22   : > { %v4334_v33 = vsub.s32 %v750_v25, %v752_v26 }
  0x23   : > { %3985 = vmatpush3.bf16.msra.mxu1 %v3982_v8  ;;  %v4352_v48 = vsub.s32 %v782_v38, %v752_v26 }
  0x24   : > { %3857 = vmatprep.subr.mxu1 %v4130_v21 }
  0x26   : > { %3855 = vmatmul.mubr.msk.f32.vlgmr.msra.gmra.mrb[0].mxu1 %vm644_vm1, %v609_v9 }
  0x27   : > { %3859 = vmatprep.mubr.msk.f32.mxu1 %vm4131_vm2, %v4130_v21 }
  0xf9   : > { %v3856_v11 = vpop.f32.mrb[0].mxu1 }
  0xfa   : > { %v4290_v12 = vadd.f32 %v3856_v11, %v3725_v10  ;;  %v717_v13 = vpop.f32.mrb[1].mxu1 }
  0xfb   : > { %v4294_v14 = vadd.f32 %v3725_v10, %v717_v13 }
  0xfc   : > { %736 = vrot.lane.b32.xlu1 %v4290_v12, %s4126_s17  ;;  %730 = vrot.lane.b32.xlu0 %v4290_v12, %s4127_s24 }
 0x100   : > { %734 = vrot.lane.b32.xlu1 %v4294_v14, %s4126_s17  ;;  %728 = vrot.lane.b32.xlu0 %v4294_v14, %s4127_s24 }
 0x104   : > { %742 = vrot.lane.b32.xlu1 %v4290_v12, %s4128_s29  ;;  %740 = vrot.lane.b32.xlu0 %v4294_v14, %s4128_s29  ;;  %s4751_s29 = sld [smem:[#allocation10_spill]] }
 0x108   : > { %1020 = vrot.lane.b32.xlu1 %v4290_v12, %s4129_s30  ;;  %1018 = vrot.lane.b32.xlu0 %v4294_v14, %s4129_s30 }
 0x16e   : > { %v4302_v15 = vpop.permute.xlu1 %736  ;;  %v4304_v16 = vpop.permute.xlu0 %730 }
 0x16f   : > { %1024 = vrot.lane.b32.xlu1 %v4304_v16, %s4129_s30  ;;  %v814_v34 = vcombine.low %v4290_v12, %v4302_v15  ;;  %v815_v35 = vcombine.high %v4290_v12, %v4302_v15 }
 0x171   : > { %v822_v44 = vrot.slane %v814_v34, %v4334_v33  ;;  %v829_v45 = vrot.slane %v815_v35, %v4334_v33 }
 0x172   : > { %v4307_v17 = vpop.permute.xlu1 %734  ;;  %v4309_v18 = vpop.permute.xlu0 %728 }
 0x173   : > { %1028 = vrot.lane.b32.xlu1 %v4302_v15, %s4129_s30  ;;  %1022 = vrot.lane.b32.xlu0 %v4309_v18, %s4129_s30  ;;  %v746_v36 = vcombine.low %v4294_v14, %v4307_v17  ;;  %v747_v37 = vcombine.high %v4294_v14, %v4307_v17 }
 0x175   : > { %v754_v46 = vrot.slane %v746_v36, %v4334_v33  ;;  %v761_v47 = vrot.slane %v747_v37, %v4334_v33 }
 0x176   : > { %v4313_v19 = vpop.permute.xlu1 %742  ;;  %v4317_v20 = vpop.permute.xlu0 %740 }
 0x177   : > { %1032 = vrot.lane.b32.xlu1 %v4313_v19, %s4129_s30  ;;  %1026 = vrot.lane.b32.xlu0 %v4307_v17, %s4129_s30  ;;  %v830_v29 = vcombine.low %v4304_v16, %v4313_v19  ;;  %v831_v30 = vcombine.high %v4304_v16, %v4313_v19  ;;  %v762_v31 = vcombine.low %v4309_v18, %v4317_v20 }
 0x178   : > { %v763_v32 = vcombine.high %v4309_v18, %v4317_v20 }
 0x179   : > { %v838_v40 = vrot.slane %v830_v29, %v4334_v33  ;;  %v845_v41 = vrot.slane %v831_v30, %v4334_v33  ;;  %v770_v42 = vrot.slane %v762_v31, %v4334_v33 }
 0x17a   : > { %v1021_v39 = vpop.permute.xlu1 %1020  ;;  %v777_v43 = vrot.slane %v763_v32, %v4334_v33  ;;  %v1019_v49 = vpop.permute.xlu0 %1018 }
 0x17b   : > { %1030 = vrot.lane.b32.xlu0 %v4317_v20, %s4129_s30  ;;  %v846_v51 = vcombine.low %v822_v44, %v838_v40  ;;  %v847_v52 = vcombine.high %v822_v44, %v838_v40  ;;  %v862_v53 = vcombine.low %v829_v45, %v845_v41  ;;  %v863_v54 = vcombine.high %v829_v45, %v845_v41 }
 0x17c   : > { %v778_v55 = vcombine.low %v754_v46, %v770_v42  ;;  %v779_v56 = vcombine.high %v754_v46, %v770_v42  ;;  %v794_v57 = vcombine.low %v761_v47, %v777_v43  ;;  %v795_v58 = vcombine.high %v761_v47, %v777_v43 }
 0x17d   : > { %v854_v61 = vrot.slane %v846_v51, %v4352_v48  ;;  %v861_v62 = vrot.slane %v847_v52, %v4352_v48  ;;  %v870_v63 = vrot.slane %v862_v53, %v4352_v48  ;;  %v877_v0 = vrot.slane %v863_v54, %v4352_v48 }
 0x17e   : > { %v786_v1 = vrot.slane %v778_v55, %v4352_v48  ;;  %v793_v2 = vrot.slane %v779_v56, %v4352_v48  ;;  %v802_v3 = vrot.slane %v794_v57, %v4352_v48  ;;  %v809_v4 = vrot.slane %v795_v58, %v4352_v48 }
 0x17f   : > { %v898_v8 = vcombine.low %v854_v61, %v870_v63  ;;  %v906_v9 = vcombine.low %v861_v62, %v877_v0  ;;  %v3730_v22 = vcombine.high %v854_v61, %v870_v63  ;;  %v3731_v23 = vcombine.high %v861_v62, %v877_v0 }
 0x180   : > { %v882_v24 = vcombine.low %v786_v1, %v802_v3  ;;  %v890_v25 = vcombine.low %v793_v2, %v809_v4  ;;  %v3728_v30 = vcombine.high %v786_v1, %v802_v3  ;;  %v3729_v31 = vcombine.high %v793_v2, %v809_v4 }
 0x181   : > { %v4367_v40 = vrot.slane %v898_v8, %v4334_v33  ;;  %v913_v41 = vrot.slane %v906_v9, %v4334_v33  ;;  %v4379_v53 = vrot.slane %v3730_v22, %v4334_v33  ;;  %v4382_v54 = vrot.slane %v3731_v23, %v4334_v33 }
 0x182   : > { %v965_v8 = vrot.slane %v3729_v31, %v4334_v33 }
 0x183   : > { %v930_v31 = vcombine.low %v4367_v40, %v913_v41 }
 0x1e1   : > { %v1025_v50 = vpop.permute.xlu1 %1024 }
 0x1e5   : > { %v1029_v59 = vpop.permute.xlu1 %1028  ;;  %v1023_v60 = vpop.permute.xlu0 %1022 }
 0x1e6   : > { %v1110_v5 = vcombine.low %v1021_v39, %v1029_v59  ;;  %v1111_v6 = vcombine.high %v1021_v39, %v1029_v59 }
 0x1e8   : > { %v1118_v26 = vrot.slane %v1110_v5, %v4334_v33  ;;  %v1125_v27 = vrot.slane %v1111_v6, %v4334_v33  ;;  %v889_v5 = vrot.slane %v882_v24, %v4334_v33  ;;  %v897_v6 = vrot.slane %v890_v25, %v4334_v33 }
 0x1e9   : > { %v1033_v7 = vpop.permute.xlu1 %1032  ;;  %v1027_v13 = vpop.permute.xlu0 %1026 }
 0x1ea   : > { %v1126_v10 = vcombine.low %v1025_v50, %v1033_v7  ;;  %v1127_v11 = vcombine.high %v1025_v50, %v1033_v7  ;;  %v1042_v32 = vcombine.low %v1019_v49, %v1027_v13  ;;  %v1043_v34 = vcombine.high %v1019_v49, %v1027_v13 }
 0x1eb   : > { %v957_v7 = vrot.slane %v3728_v30, %v4334_v33  ;;  %v914_v30 = vcombine.low %v889_v5, %v897_v6 }
 0x1ec   : > { %v1134_v28 = vrot.slane %v1126_v10, %v4334_v33  ;;  %v1141_v29 = vrot.slane %v1127_v11, %v4334_v33  ;;  %v1050_v49 = vrot.slane %v1042_v32, %v4334_v33  ;;  %v1057_v50 = vrot.slane %v1043_v34, %v4334_v33 }
 0x1ed   : > { %v1031_v39 = vpop.permute.xlu0 %1030  ;;  %v915_v32 = vcombine.high %v889_v5, %v897_v6  ;;  %v931_v34 = vcombine.high %v4367_v40, %v913_v41  ;;  %v938_v40 = vrot.slane %v930_v31, %v4352_v48 }
 0x1ee   : > { %v1142_v35 = vcombine.low %v1118_v26, %v1134_v28  ;;  %v1143_v36 = vcombine.high %v1118_v26, %v1134_v28  ;;  %v1158_v37 = vcombine.low %v1125_v27, %v1141_v29  ;;  %v1159_v38 = vcombine.high %v1125_v27, %v1141_v29 }
 0x1ef   : > { %v1058_v42 = vcombine.low %v1023_v60, %v1031_v39  ;;  %v1059_v43 = vcombine.high %v1023_v60, %v1031_v39  ;;  %v982_v39 = vcombine.low %v957_v7, %v965_v8  ;;  %v929_v41 = vrot.slane %v915_v32, %v4352_v48 }
 0x1f0   : > { %v1150_v44 = vrot.slane %v1142_v35, %v4352_v48  ;;  %v1157_v45 = vrot.slane %v1143_v36, %v4352_v48  ;;  %v1166_v46 = vrot.slane %v1158_v37, %v4352_v48  ;;  %v1173_v47 = vrot.slane %v1159_v38, %v4352_v48 }
 0x1f1   : > { %v1066_v51 = vrot.slane %v1058_v42, %v4334_v33  ;;  %v1073_v52 = vrot.slane %v1059_v43, %v4334_v33  ;;  %v998_v42 = vcombine.low %v4379_v53, %v4382_v54 }
 0x1f2   : > { %v1194_v55 = vcombine.low %v1150_v44, %v1166_v46  ;;  %v1202_v56 = vcombine.low %v1157_v45, %v1173_v47  ;;  %v3734_v63 = vcombine.high %v1150_v44, %v1166_v46  ;;  %v3735_v0 = vcombine.high %v1157_v45, %v1173_v47 }
 0x1f3   : > { %v1074_v57 = vcombine.low %v1050_v49, %v1066_v51  ;;  %v1075_v58 = vcombine.high %v1050_v49, %v1066_v51  ;;  %v1090_v59 = vcombine.low %v1057_v50, %v1073_v52  ;;  %v1091_v60 = vcombine.high %v1057_v50, %v1073_v52 }
 0x1f4   : > { %v1201_v61 = vrot.slane %v1194_v55, %v4334_v33  ;;  %v1209_v62 = vrot.slane %v1202_v56, %v4334_v33  ;;  %v1269_v23 = vrot.slane %v3734_v63, %v4334_v33  ;;  %v1277_v26 = vrot.slane %v3735_v0, %v4334_v33 }
 0x1f5   : > { %v1082_v1 = vrot.slane %v1074_v57, %v4352_v48  ;;  %v1089_v2 = vrot.slane %v1075_v58, %v4352_v48  ;;  %v1098_v3 = vrot.slane %v1090_v59, %v4352_v48  ;;  %v1105_v4 = vrot.slane %v1091_v60, %v4352_v48 }
 0x1f6   : > { %v1226_v22 = vcombine.low %v1201_v61, %v1209_v62  ;;  %v1227_v27 = vcombine.high %v1201_v61, %v1209_v62  ;;  %v1294_v38 = vcombine.low %v1269_v23, %v1277_v26  ;;  %v922_v47 = vrot.slane %v914_v30, %v4352_v48 }
 0x1f7   : > { %v1178_v9 = vcombine.low %v1082_v1, %v1098_v3  ;;  %v1186_v10 = vcombine.low %v1089_v2, %v1105_v4  ;;  %v3732_v11 = vcombine.high %v1082_v1, %v1098_v3  ;;  %v3733_v13 = vcombine.high %v1089_v2, %v1105_v4 }
 0x1f8   : > { %v1234_v44 = vrot.slane %v1226_v22, %v4352_v48  ;;  %v1241_v46 = vrot.slane %v1227_v27, %v4352_v48  ;;  %v945_v49 = vrot.slane %v931_v34, %v4352_v48  ;;  %v990_v56 = vrot.slane %v982_v39, %v4352_v48 }
 0x1f9   : > { %v1185_v28 = vrot.slane %v1178_v9, %v4334_v33  ;;  %v1193_v24 = vrot.slane %v1186_v10, %v4334_v33  ;;  %v1253_v25 = vrot.slane %v3732_v11, %v4334_v33  ;;  %v1261_v29 = vrot.slane %v3733_v13, %v4334_v33 }
 0x1fa   : > { %v983_v57 = vcombine.high %v957_v7, %v965_v8  ;;  %v1295_v58 = vcombine.high %v1269_v23, %v1277_v26  ;;  %v1302_v59 = vrot.slane %v1294_v38, %v4352_v48  ;;  %v1006_v60 = vrot.slane %v998_v42, %v4352_v48 }
 0x1fb   : > { %v1210_v35 = vcombine.low %v1185_v28, %v1193_v24  ;;  %v1278_v36 = vcombine.low %v1253_v25, %v1261_v29  ;;  %v1211_v37 = vcombine.high %v1185_v28, %v1193_v24  ;;  %v1279_v50 = vcombine.high %v1253_v25, %v1261_v29 }
 0x1fc   : > { %v946_v61 = vcombine.low %v922_v47, %v938_v40  ;;  %v948_v62 = vcombine.low %v929_v41, %v945_v49  ;;  %v999_v63 = vcombine.high %v4379_v53, %v4382_v54  ;;  %v947_v3 = vcombine.high %v922_v47, %v938_v40 }
 0x1fd   : > { %v1218_v43 = vrot.slane %v1210_v35, %v4352_v48  ;;  %v1225_v45 = vrot.slane %v1211_v37, %v4352_v48  ;;  %v1286_v55 = vrot.slane %v1278_v36, %v4352_v48  ;;  %v1293_v2 = vrot.slane %v1279_v50, %v4352_v48 }
 0x1fe   : > { %v1309_v4 = vrot.slane %v1295_v58, %v4352_v48  ;;  %v1014_v53 = vcombine.low %v990_v56, %v1006_v60  ;;  %v997_v54 = vrot.slane %v983_v57, %v4352_v48  ;;  %v1013_v5 = vrot.slane %v999_v63, %v4352_v48 }
 0x1ff   : > { %v1242_v51 = vcombine.low %v1218_v43, %v1234_v44  ;;  %v1244_v52 = vcombine.low %v1225_v45, %v1241_v46  ;;  %v1243_v0 = vcombine.high %v1218_v43, %v1234_v44  ;;  %v1310_v1 = vcombine.low %v1286_v55, %v1302_v59 }
 0x200   : > { %v1245_v6 = vcombine.high %v1225_v45, %v1241_v46  ;;  %v1312_v7 = vcombine.low %v1293_v2, %v1309_v4  ;;  %v949_v8 = vcombine.high %v929_v41, %v945_v49  ;;  %v1016_v9 = vcombine.low %v997_v54, %v1013_v5 }
 0x201   : > { %3858 = vmatpush3.xpose.msk.msra.mxu1 %vm1610_vm3, %v1242_v51  ;;  %3868 = vmatpush3.xpose.msk.msra.mxu0 %vm1610_vm3, %v1244_v52  ;;  %v1311_v10 = vcombine.high %v1286_v55, %v1302_v59  ;;  %v1015_v11 = vcombine.high %v990_v56, %v1006_v60  ;;  %v1313_v13 = vcombine.high %v1293_v2, %v1309_v4 }
 0x202   : > { %3862 = vmatprep.subr.mxu1 %v4130_v21  ;;  %3877 = vmatprep.subr.mxu0 %v4130_v21  ;;  %v1017_v22 = vcombine.high %v997_v54, %v1013_v5 }
 0x204   : > { %3860 = vmatmul.mubr.msk.f32.vlgmr.msra.gmra.mrb[2].mxu1 %vm1610_vm3, %v946_v61  ;;  %3870 = vmatmul.mubr.msk.f32.vlgmr.msra.gmra.mrb[0].mxu0 %vm1610_vm3, %v948_v62 }
 0x205   : > { %3863 = vmatpush3.xpose.msk.msra.mxu1 %vm1610_vm3, %v1243_v0  ;;  %3878 = vmatpush3.xpose.msk.msra.mxu0 %vm1610_vm3, %v1310_v1 }
 0x206   : > { %3864 = vmatprep.mubr.msk.f32.mxu1 %vm4131_vm2, %v4130_v21  ;;  %3879 = vmatprep.mubr.msk.f32.mxu0 %vm4131_vm2, %v4130_v21 }
 0x207   : > { %3872 = vmatprep.subr.mxu1 %v4130_v21  ;;  %3887 = vmatprep.subr.mxu0 %v4130_v21 }
 0x208   : > { %3865 = vmatmul.mubr.msk.f32.vlgmr.msra.gmra.mrb[4].mxu1 %vm1610_vm3, %v947_v3  ;;  %3880 = vmatmul.mubr.msk.f32.vlgmr.msra.gmra.mrb[2].mxu0 %vm1610_vm3, %v1014_v53 }
 0x209   : > { %3873 = vmatpush3.xpose.msk.msra.mxu1 %vm1610_vm3, %v1245_v6  ;;  %3888 = vmatpush3.xpose.msk.msra.mxu0 %vm1610_vm3, %v1312_v7 }
 0x20a   : > { %3874 = vmatprep.mubr.msk.f32.mxu1 %vm4131_vm2, %v4130_v21  ;;  %3889 = vmatprep.mubr.msk.f32.mxu0 %vm4131_vm2, %v4130_v21 }
 0x20b   : > { %3882 = vmatprep.subr.mxu1 %v4130_v21  ;;  %3897 = vmatprep.subr.mxu0 %v4130_v21 }
 0x20c   : > { %3875 = vmatmul.mubr.msk.f32.vlgmr.msra.gmra.mrb[6].mxu1 %vm1610_vm3, %v949_v8  ;;  %3890 = vmatmul.mubr.msk.f32.vlgmr.msra.gmra.mrb[4].mxu0 %vm1610_vm3, %v1016_v9 }
 0x20d   : > { %3883 = vmatpush3.xpose.msk.msra.mxu1 %vm1610_vm3, %v1311_v10  ;;  %3884 = vmatprep.mubr.msk.f32.mxu1 %vm4131_vm2, %v4130_v21 }
 0x20e   : > { %3892 = vmatprep.subr.mxu1 %v4130_v21  ;;  %3899 = vmatprep.mubr.msk.f32.mxu0 %vm4131_vm2, %v4130_v21 }
 0x210   : > { %3885 = vmatmul.mubr.msk.f32.vlgmr.msra.gmra.mrb[8].mxu1 %vm1610_vm3, %v1015_v11 }
 0x211   : > { %3893 = vmatpush3.xpose.msk.msra.mxu1 %vm1610_vm3, %v1313_v13  ;;  %3894 = vmatprep.mubr.msk.f32.mxu1 %vm4131_vm2, %v4130_v21 }
 0x212   : > { %3902 = vmatprep.subr.mxu1 %v4130_v21 }
 0x214   : > { %3895 = vmatmul.mubr.msk.f32.vlgmr.msra.gmra.mrb[10].mxu1 %vm1610_vm3, %v1017_v22 }
 0x215   : > { %3904 = vmatprep.mubr.msk.f32.mxu1 %vm4131_vm2, %v4130_v21 }
 0x2d7   : > { %v1683_v23 = vpop.f32.mrb[2].mxu1  ;;  %v1835_v26 = vpop.f32.mrb[0].mxu0 }
 0x2d8   : > { %v3861_v27 = vpop.f32.mrb[3].mxu1  ;;  %v3871_v28 = vpop.f32.mrb[1].mxu0  ;;  %v2219_v24 = vsel %vm1610_vm3, %v1683_v23, -inf  ;;  %v2225_v32 = vsel %vm1610_vm3, %v1835_v26, -inf }
 0x2d9   : > { %2220 = vmax.xlane.f32.xlu0 %v2219_v24 }
 0x2db   : > { %v1759_v25 = vpop.f32.mrb[4].mxu1  ;;  %v1987_v29 = vpop.f32.mrb[2].mxu0 }
 0x2dc   : > { %v3866_v30 = vpop.f32.mrb[5].mxu1  ;;  %v3881_v31 = vpop.f32.mrb[3].mxu0  ;;  %v2222_v34 = vsel %vm1610_vm3, %v1759_v25, -inf  ;;  %v2231_v39 = vsel %vm1610_vm3, %v1987_v29, -inf }
 0x2dd   : > { %2226 = vmax.xlane.f32.xlu0 %v2225_v32  ;;  %2223 = vmax.xlane.f32.xlu1 %v2222_v34 }
 0x2df   : > { %v1911_v35 = vpop.f32.mrb[6].mxu1  ;;  %v2139_v36 = vpop.f32.mrb[4].mxu0 }
 0x2e0   : > { %v3876_v37 = vpop.f32.mrb[7].mxu1  ;;  %v3891_v38 = vpop.f32.mrb[5].mxu0  ;;  %v2228_v42 = vsel %vm1610_vm3, %v1911_v35, -inf  ;;  %v2237_v45 = vsel %vm1610_vm3, %v2139_v36, -inf }
 0x2e1   : > { %2232 = vmax.xlane.f32.xlu1 %v2231_v39  ;;  %2229 = vmax.xlane.f32.xlu0 %v2228_v42 }
 0x2e3   : > { %v2063_v43 = vpop.f32.mrb[8].mxu1 }
 0x2e4   : > { %v3886_v44 = vpop.f32.mrb[9].mxu1  ;;  %v2234_v46 = vsel %vm1610_vm3, %v2063_v43, -inf }
 0x2e5   : > { %2238 = vmax.xlane.f32.xlu1 %v2237_v45  ;;  %2235 = vmax.xlane.f32.xlu0 %v2234_v46 }
 0x2e7   : > { %v2215_v47 = vpop.f32.mrb[10].mxu1 }
 0x2e8   : > { %v3896_v40 = vpop.f32.mrb[11].mxu1  ;;  %v2240_v41 = vsel %vm1610_vm3, %v2215_v47, -inf }
 0x2e9   : > { %2241 = vmax.xlane.f32.xlu0 %v2240_v41 }
 0x2f6   : > { %1314 = vrot.lane.b32.xlu1 %v4294_v14, %s4134_s1 }
 0x2fa   : > { %1318 = vrot.lane.b32.xlu1 %v4309_v18, %s4134_s1 }
 0x2fe   : > { %1320 = vrot.lane.b32.xlu1 %v4304_v16, %s4134_s1 }
 0x2ff   : > { %1316 = vrot.lane.b32.xlu0 %v4290_v12, %s4134_s1 }
 0x302   : > { %1324 = vrot.lane.b32.xlu1 %v4302_v15, %s4134_s1 }
 0x303   : > { %1322 = vrot.lane.b32.xlu0 %v4307_v17, %s4134_s1 }
 0x306   : > { %1328 = vrot.lane.b32.xlu1 %v4313_v19, %s4134_s1 }
 0x307   : > { %1326 = vrot.lane.b32.xlu0 %v4317_v20, %s4134_s1 }
 0x366   : > { %v2221_v49 = vpop.xlane.xlu0 %2220 }
 0x367   : > { %v2243_v50 = vsub.f32 %v1683_v23, %v2221_v49 }
 0x369   : > { %v2251_v51 = vmul.f32 1.442695, %v2243_v50 }
 0x36a   : > { %v2227_v52 = vpop.xlane.xlu0 %2226  ;;  %v2224_v55 = vpop.xlane.xlu1 %2223 }
 0x36b   : > { %4046 = vpow2.f32 %v2251_v51  ;;  %v2245_v14 = vsub.f32 %v1835_v26, %v2227_v52  ;;  %v2244_v18 = vsub.f32 %v1759_v25, %v2224_v55 }
 0x36d   : > { %v2255_v56 = vmul.f32 1.442695, %v2245_v14  ;;  %v2253_v16 = vmul.f32 1.442695, %v2244_v18 }
 0x36e   : > { %v2233_v57 = vpop.xlane.xlu1 %2232  ;;  %v2230_v12 = vpop.xlane.xlu0 %2229 }
 0x36f   : > { %4048 = vpow2.f32 %v2255_v56  ;;  %v2247_v15 = vsub.f32 %v1987_v29, %v2233_v57  ;;  %v2246_v58 = vsub.f32 %v1911_v35, %v2230_v12 }
 0x370   : > { %4050 = vpow2.f32 %v2253_v16 }
 0x371   : > { %v2259_v17 = vmul.f32 1.442695, %v2247_v15  ;;  %v2257_v19 = vmul.f32 1.442695, %v2246_v58 }
 0x372   : > { %v2239_v59 = vpop.xlane.xlu1 %2238  ;;  %v2236_v20 = vpop.xlane.xlu0 %2235 }
 0x373   : > { %4052 = vpow2.f32 %v2259_v17  ;;  %v2249_v60 = vsub.f32 %v2139_v36, %v2239_v59  ;;  %v2248_v61 = vsub.f32 %v2063_v43, %v2236_v20 }
 0x374   : > { %4054 = vpow2.f32 %v2257_v19 }
 0x375   : > { %v4478_v62 = vpop.eup %4046  ;;  %v2263_v63 = vmul.f32 1.442695, %v2249_v60  ;;  %v2261_v0 = vmul.f32 1.442695, %v2248_v61 }
 0x376   : > { %v1315_v1 = vpop.permute.xlu1 %1314  ;;  %v2242_v2 = vpop.xlane.xlu0 %2241  ;;  %v2267_v3 = vsel %vm1610_vm3, %v4478_v62, 0.0 }
 0x377   : > { %v2250_v4 = vsub.f32 %v2215_v47, %v2242_v2  ;;  %2268 = vadd.xlane.f32.xlu1 %v2267_v3  ;;  %4056 = vpow2.f32 %v2261_v0 }
 0x378   : > { %4058 = vpow2.f32 %v2263_v63 }
 0x379   : > { %v4482_v53 = vpop.eup %4048  ;;  %v2265_v54 = vmul.f32 1.442695, %v2250_v4 }
 0x37a   : > { %v4484_v5 = vpop.eup %4050  ;;  %v1319_v6 = vpop.permute.xlu1 %1318  ;;  %v2273_v8 = vsel %vm1610_vm3, %v4482_v53, 0.0 }
 0x37b   : > { %v1317_v7 = vpop.permute.xlu0 %1316  ;;  %2274 = vadd.xlane.f32.xlu1 %v2273_v8  ;;  %v2270_v9 = vsel %vm1610_vm3, %v4484_v5, 0.0  ;;  %4060 = vpow2.f32 %v2265_v54 }
 0x37c   : > { %2271 = vadd.xlane.f32.xlu0 %v2270_v9 }
 0x37d   : > { %v4490_v10 = vpop.eup %4052 }
 0x37e   : > { %v1321_v11 = vpop.permute.xlu1 %1320  ;;  %v2279_v22 = vsel %vm1610_vm3, %v4490_v10, 0.0  ;;  %v4494_v23 = vpop.eup %4054 }
 0x37f   : > { %v1323_v13 = vpop.permute.xlu0 %1322  ;;  %v2276_v32 = vsel %vm1610_vm3, %v4494_v23, 0.0 }
 0x380   : > { %2280 = vadd.xlane.f32.xlu0 %v2279_v22  ;;  %v1338_v26 = vcombine.low %v1315_v1, %v1323_v13  ;;  %v1339_v27 = vcombine.high %v1315_v1, %v1323_v13 }
 0x381   : > { %v4496_v28 = vpop.eup %4056 }
 0x382   : > { %v1325_v24 = vpop.permute.xlu1 %1324  ;;  %v4498_v29 = vpop.eup %4058  ;;  %v2282_v35 = vsel %vm1610_vm3, %v4496_v28, 0.0  ;;  %v1346_v36 = vrot.slane %v1338_v26, %v4334_v33  ;;  %v1353_v37 = vrot.slane %v1339_v27, %v4334_v33 }
 0x383   : > { %v1327_v25 = vpop.permute.xlu0 %1326  ;;  %v1406_v34 = vcombine.low %v1317_v7, %v1325_v24  ;;  %2283 = vadd.xlane.f32.xlu1 %v2282_v35  ;;  %v1407_v42 = vcombine.high %v1317_v7, %v1325_v24  ;;  %v2285_v44 = vsel %vm1610_vm3, %v4498_v29, 0.0 }
 0x384   : > { %v1354_v30 = vcombine.low %v1319_v6, %v1327_v25  ;;  %v1355_v31 = vcombine.high %v1319_v6, %v1327_v25  ;;  %2277 = vadd.xlane.f32.xlu0 %v2276_v32 }
 0x385   : > { %v4510_v45 = vpop.eup %4060  ;;  %v1414_v49 = vrot.slane %v1406_v34, %v4334_v33  ;;  %v1421_v56 = vrot.slane %v1407_v42, %v4334_v33 }
 0x386   : > { %v1362_v38 = vrot.slane %v1354_v30, %v4334_v33  ;;  %v1369_v39 = vrot.slane %v1355_v31, %v4334_v33  ;;  %v1329_v43 = vpop.permute.xlu1 %1328  ;;  %v2288_v12 = vsel %vm1610_vm3, %v4510_v45, 0.0 }
 0x387   : > { %v1422_v50 = vcombine.low %v1321_v11, %v1329_v43  ;;  %v1423_v51 = vcombine.high %v1321_v11, %v1329_v43 }
 0x388   : > { %v1370_v46 = vcombine.low %v1346_v36, %v1362_v38  ;;  %v1371_v47 = vcombine.high %v1346_v36, %v1362_v38  ;;  %v1386_v40 = vcombine.low %v1353_v37, %v1369_v39  ;;  %v1387_v41 = vcombine.high %v1353_v37, %v1369_v39  ;;  %2286 = vadd.xlane.f32.xlu0 %v2285_v44 }
 0x389   : > { %v1430_v16 = vrot.slane %v1422_v50, %v4334_v33  ;;  %v1437_v57 = vrot.slane %v1423_v51, %v4334_v33 }
 0x38a   : > { %v1378_v52 = vrot.slane %v1370_v46, %v4352_v48  ;;  %v1385_v55 = vrot.slane %v1371_v47, %v4352_v48  ;;  %v1394_v14 = vrot.slane %v1386_v40, %v4352_v48  ;;  %v1401_v18 = vrot.slane %v1387_v41, %v4352_v48 }
 0x38b   : > { %v1438_v59 = vcombine.low %v1414_v49, %v1430_v16  ;;  %v1439_v20 = vcombine.high %v1414_v49, %v1430_v16  ;;  %v1454_v60 = vcombine.low %v1421_v56, %v1437_v57  ;;  %v1455_v61 = vcombine.high %v1421_v56, %v1437_v57 }
 0x38c   : > { %v1474_v15 = vcombine.low %v1378_v52, %v1394_v14  ;;  %v1482_v58 = vcombine.low %v1385_v55, %v1401_v18  ;;  %v3736_v17 = vcombine.high %v1378_v52, %v1394_v14  ;;  %v3737_v19 = vcombine.high %v1385_v55, %v1401_v18  ;;  %2289 = vadd.xlane.f32.xlu0 %v2288_v12 }
 0x38d   : > { %v1446_v3 = vrot.slane %v1438_v59, %v4352_v48  ;;  %v1453_v4 = vrot.slane %v1439_v20, %v4352_v48  ;;  %v1462_v54 = vrot.slane %v1454_v60, %v4352_v48  ;;  %v1469_v6 = vrot.slane %v1455_v61, %v4352_v48 }
 0x38e   : > { %v1481_v63 = vrot.slane %v1474_v15, %v4334_v33  ;;  %v1489_v0 = vrot.slane %v1482_v58, %v4334_v33  ;;  %v1549_v1 = vrot.slane %v3736_v17, %v4334_v33  ;;  %v1557_v2 = vrot.slane %v3737_v19, %v4334_v33 }
 0x38f   : > { %v1490_v11 = vcombine.low %v1446_v3, %v1462_v54  ;;  %v1498_v13 = vcombine.low %v1453_v4, %v1469_v6  ;;  %v3738_v22 = vcombine.high %v1446_v3, %v1462_v54  ;;  %v3739_v26 = vcombine.high %v1453_v4, %v1469_v6 }
 0x390   : > { %v1507_v7 = vcombine.high %v1481_v63, %v1489_v0  ;;  %v1574_v8 = vcombine.low %v1549_v1, %v1557_v2  ;;  %v1575_v9 = vcombine.high %v1549_v1, %v1557_v2  ;;  %v1506_v27 = vcombine.low %v1481_v63, %v1489_v0 }
 0x391   : > { %v1497_v24 = vrot.slane %v1490_v11, %v4334_v33  ;;  %v1505_v25 = vrot.slane %v1498_v13, %v4334_v33  ;;  %v1565_v30 = vrot.slane %v3738_v22, %v4334_v33  ;;  %v1573_v31 = vrot.slane %v3739_v26, %v4334_v33 }
 0x392   : > { %v1514_v37 = vrot.slane %v1506_v27, %v4352_v48  ;;  %v1521_v38 = vrot.slane %v1507_v7, %v4352_v48  ;;  %v1582_v46 = vrot.slane %v1574_v8, %v4352_v48  ;;  %v4544_v47 = vrot.slane %v1575_v9, %v4352_v48 }
 0x393   : > { %v1522_v32 = vcombine.low %v1497_v24, %v1505_v25  ;;  %v1523_v34 = vcombine.high %v1497_v24, %v1505_v25  ;;  %v1590_v35 = vcombine.low %v1565_v30, %v1573_v31  ;;  %v1591_v36 = vcombine.high %v1565_v30, %v1573_v31 }
 0x395   : > { %v1530_v39 = vrot.slane %v1522_v32, %v4352_v48  ;;  %v1537_v42 = vrot.slane %v1523_v34, %v4352_v48  ;;  %v1598_v43 = vrot.slane %v1590_v35, %v4352_v48  ;;  %v4540_v44 = vrot.slane %v1591_v36, %v4352_v48 }
 0x397   : > { %v1538_v40 = vcombine.low %v1514_v37, %v1530_v39  ;;  %v1539_v41 = vcombine.high %v1514_v37, %v1530_v39  ;;  %v1540_v49 = vcombine.low %v1521_v38, %v1537_v42  ;;  %v1541_v50 = vcombine.high %v1521_v38, %v1537_v42 }
 0x398   : > { %v1606_v51 = vcombine.low %v1582_v46, %v1598_v43  ;;  %v1608_v52 = vcombine.low %v4544_v47, %v4540_v44  ;;  %v1607_v55 = vcombine.high %v1582_v46, %v1598_v43  ;;  %v1609_v14 = vcombine.high %v4544_v47, %v4540_v44 }
 0x399   : > { %3898 = vmatpush3.msra.mxu0 %v1538_v40  ;;  %3903 = vmatpush3.msra.mxu1 %v1539_v41 }
 0x39a   : > { %3907 = vmatprep.subr.mxu0 %v4130_v21  ;;  %3912 = vmatprep.subr.mxu1 %v4130_v21 }
 0x404   : > { %v2269_v18 = vpop.xlane.xlu1 %2268 }
 0x405   : > { %4062 = vrcp.f32 %v2269_v18 }
 0x408   : > { %v2275_v56 = vpop.xlane.xlu1 %2274 }
 0x409   : > { %4064 = vrcp.f32 %v2275_v56  ;;  %v2272_v16 = vpop.xlane.xlu0 %2271 }
 0x40a   : > { %4066 = vrcp.f32 %v2272_v16 }
 0x40d   : > { %v2281_v57 = vpop.xlane.xlu0 %2280 }
 0x40e   : > { %4068 = vrcp.f32 %v2281_v57 }
 0x40f   : > { %v4063_v12 = vpop.eup %4062 }
 0x410   : > { %v2292_v15 = vmul.f32 %v4063_v12, %v4478_v62  ;;  %v2284_v17 = vpop.xlane.xlu1 %2283 }
 0x411   : > { %v2278_v58 = vpop.xlane.xlu0 %2277 }
 0x412   : > { %4070 = vrcp.f32 %v2278_v58  ;;  %3900 = vmatmul.mubr.msk.f32.vlgmr.msra.gmra.mrb[6].mxu0 %vm1610_vm3, %v2292_v15 }
 0x413   : > { %v4065_v19 = vpop.eup %4064  ;;  %3908 = vmatpush3.msra.mxu0 %v1540_v49  ;;  %3909 = vmatprep.mubr.msk.f32.mxu0 %vm4131_vm2, %v4130_v21  ;;  %4072 = vrcp.f32 %v2284_v17 }
 0x414   : > { %v4067_v59 = vpop.eup %4066  ;;  %v2296_v20 = vmul.f32 %v4065_v19, %v4482_v53  ;;  %3917 = vmatprep.subr.mxu0 %v4130_v21 }
 0x415   : > { %v2294_v60 = vmul.f32 %v4067_v59, %v4484_v5  ;;  %v2287_v61 = vpop.xlane.xlu0 %2286 }
 0x416   : > { %4074 = vrcp.f32 %v2287_v61  ;;  %3910 = vmatmul.mubr.msk.f32.vlgmr.msra.gmra.mrb[8].mxu0 %vm1610_vm3, %v2296_v20 }
 0x417   : > { %3905 = vmatmul.mubr.msk.f32.vlgmr.msra.gmra.mrb[12].mxu1 %vm1610_vm3, %v2294_v60  ;;  %3918 = vmatpush3.msra.mxu0 %v1606_v51 }
 0x418   : > { %v4069_v62 = vpop.eup %4068  ;;  %3913 = vmatpush3.msra.mxu1 %v1541_v50  ;;  %3919 = vmatprep.mubr.msk.f32.mxu0 %vm4131_vm2, %v4130_v21 }
 0x419   : > { %v2300_v63 = vmul.f32 %v4069_v62, %v4490_v10  ;;  %v2290_v53 = vpop.xlane.xlu0 %2289  ;;  %3927 = vmatprep.subr.mxu0 %v4130_v21  ;;  %3914 = vmatprep.mubr.msk.f32.mxu1 %vm4131_vm2, %v4130_v21 }
 0x41a   : > { %4076 = vrcp.f32 %v2290_v53  ;;  %3922 = vmatprep.subr.mxu1 %v4130_v21 }
 0x41b   : > { %3920 = vmatmul.mubr.msk.f32.vlgmr.msra.gmra.mrb[10].mxu0 %vm1610_vm3, %v2300_v63 }
 0x41c   : > { %v4071_v5 = vpop.eup %4070  ;;  %3928 = vmatpush3.msra.mxu0 %v1608_v52  ;;  %3929 = vmatprep.mubr.msk.f32.mxu0 %vm4131_vm2, %v4130_v21 }
 0x41d   : > { %v2298_v0 = vmul.f32 %v4071_v5, %v4494_v23  ;;  %v4073_v1 = vpop.eup %4072 }
 0x41e   : > { %v2302_v2 = vmul.f32 %v4073_v1, %v4496_v28 }
 0x41f   : > { %3915 = vmatmul.mubr.msk.f32.vlgmr.msra.gmra.mrb[14].mxu1 %vm1610_vm3, %v2298_v0 }
 0x420   : > { %v4075_v10 = vpop.eup %4074  ;;  %3923 = vmatpush3.msra.mxu1 %v1607_v55  ;;  %3924 = vmatprep.mubr.msk.f32.mxu1 %vm4131_vm2, %v4130_v21 }
 0x421   : > { %v2304_v3 = vmul.f32 %v4075_v10, %v4498_v29  ;;  %3932 = vmatprep.subr.mxu1 %v4130_v21 }
 0x423   : > { %3925 = vmatmul.mubr.msk.f32.vlgmr.msra.gmra.mrb[16].mxu1 %vm1610_vm3, %v2302_v2  ;;  %3930 = vmatmul.mubr.msk.f32.vlgmr.msra.gmra.mrb[12].mxu0 %vm1610_vm3, %v2304_v3 }
 0x424   : > { %v4077_v4 = vpop.eup %4076  ;;  %3933 = vmatpush3.msra.mxu1 %v1609_v14  ;;  %3934 = vmatprep.mubr.msk.f32.mxu1 %vm4131_vm2, %v4130_v21 }
 0x425   : > { %v2306_v23 = vmul.f32 %v4077_v4, %v4510_v45 }
 0x427   : > { %3935 = vmatmul.mubr.msk.f32.vlgmr.msra.gmra.mrb[18].mxu1 %vm1610_vm3, %v2306_v23 }
 0x4e5   : > { %v2376_v54 = vpop.f32.mrb[6].mxu0 }
 0x4e6   : > { %v3901_v6 = vpop.f32.mrb[7].mxu0 }
 0x4e9   : > { %v2522_v28 = vpop.f32.mrb[8].mxu0 }
 0x4ea   : > { %v2449_v7 = vpop.f32.mrb[12].mxu1  ;;  %v2891_v29 = vcombine.low %v2376_v54, %v2522_v28  ;;  %v2892_v8 = vcombine.high %v2376_v54, %v2522_v28  ;;  %v3911_v9 = vpop.f32.mrb[9].mxu0 }
 0x4eb   : > { %v3906_v11 = vpop.f32.mrb[13].mxu1 }
 0x4ec   : > { %v2899_v30 = vrot.slane %v2891_v29, %v4334_v33  ;;  %v2906_v45 = vrot.slane %v2892_v8, %v4334_v33  ;;  %v615_v29 = vld [vmem:[%s4235_s20] sm:$0xff]  ;;  %v616_v8 = vld [vmem:[%s4235_s20 + $0x8] sm:$0xff] }
 0x4ee   : > { %v2668_v13 = vpop.f32.mrb[10].mxu0 }
 0x4ef   : > { %v3921_v22 = vpop.f32.mrb[11].mxu0 }
 0x4f0   : > { %v3986_v22 = vpack.c.bf16 %v616_v8, %v615_v29 }
 0x4f2   : > { %v2595_v26 = vpop.f32.mrb[14].mxu1  ;;  %3987 = vmatprep.subr.bf16.mxu0 %v3986_v22 }
 0x4f3   : > { %v2907_v27 = vcombine.low %v2449_v7, %v2595_v26  ;;  %v2908_v24 = vcombine.high %v2449_v7, %v2595_v26  ;;  %v3916_v25 = vpop.f32.mrb[15].mxu1  ;;  %3989 = vmatpush3.bf16.msra.mxu0 %v3986_v22 }
 0x4f5   : > { %v2915_v31 = vrot.slane %v2907_v27, %v4334_v33  ;;  %v2922_v32 = vrot.slane %v2908_v24, %v4334_v33 }
 0x4f6   : > { %v2741_v34 = vpop.f32.mrb[16].mxu1  ;;  %v2814_v35 = vpop.f32.mrb[12].mxu0 }
 0x4f7   : > { %v2923_v36 = vcombine.low %v2899_v30, %v2915_v31  ;;  %v2924_v37 = vcombine.high %v2899_v30, %v2915_v31  ;;  %v2939_v38 = vcombine.low %v2906_v45, %v2922_v32  ;;  %v2940_v39 = vcombine.high %v2906_v45, %v2922_v32  ;;  %v3926_v42 = vpop.f32.mrb[17].mxu1  ;;  %v3931_v43 = vpop.f32.mrb[13].mxu0 }
 0x4f8   : > { %v2959_v44 = vcombine.low %v2668_v13, %v2814_v35  ;;  %v2960_v46 = vcombine.high %v2668_v13, %v2814_v35 }
 0x4f9   : > { %v2947_v47 = vrot.slane %v2939_v38, %v4352_v48  ;;  %v2931_v41 = vrot.slane %v2923_v36, %v4352_v48  ;;  %v2938_v49 = vrot.slane %v2924_v37, %v4352_v48  ;;  %v2954_v50 = vrot.slane %v2940_v39, %v4352_v48 }
 0x4fa   : > { %v2887_v40 = vpop.f32.mrb[18].mxu1  ;;  %v2967_v18 = vrot.slane %v2959_v44, %v4334_v33  ;;  %v2974_v56 = vrot.slane %v2960_v46, %v4334_v33 }
 0x4fb   : > { %v3936_v51 = vpop.f32.mrb[19].mxu1  ;;  %v2975_v52 = vcombine.low %v2741_v34, %v2887_v40  ;;  %v2976_v55 = vcombine.high %v2741_v34, %v2887_v40  ;;  %v2957_v14 = vcombine.high %v2947_v47, %v4130_v21  ;;  %v2955_v12 = vcombine.high %v2931_v41, %v4130_v21  ;;  %v618_v40 = vld [vmem:[%s4235_s20 + $0x18] sm:$0xff] }
 0x4fc   : > { %v2956_v15 = vcombine.high %v2938_v49, %v4130_v21  ;;  %v2958_v58 = vcombine.high %v2954_v50, %v4130_v21 }
 0x4fd   : > { %v2983_v16 = vrot.slane %v2975_v52, %v4334_v33  ;;  %v2990_v57 = vrot.slane %v2976_v55, %v4334_v33  ;;  %v3095_v60 = vcombine.low %v2947_v47, %v2957_v14  ;;  %v3027_v5 = vcombine.low %v2931_v41, %v2955_v12  ;;  %v617_v47 = vld [vmem:[%s4235_s20 + $0x10] sm:$0xff] }
 0x4fe   : > { %v3043_v0 = vcombine.low %v2938_v49, %v2956_v15  ;;  %v3111_v1 = vcombine.low %v2954_v50, %v2958_v58 }
 0x4ff   : > { %v2991_v17 = vcombine.low %v2967_v18, %v2983_v16  ;;  %v2992_v19 = vcombine.high %v2967_v18, %v2983_v16  ;;  %v3007_v59 = vcombine.low %v2974_v56, %v2990_v57  ;;  %v3008_v20 = vcombine.high %v2974_v56, %v2990_v57 }
 0x500   : > { %v3102_v23 = vrot.slane %v3095_v60, %v4334_v33  ;;  %v3118_v9 = vrot.slane %v3111_v1, %v4334_v33  ;;  %v3034_v11 = vrot.slane %v3027_v5, %v4334_v33  ;;  %v3050_v13 = vrot.slane %v3043_v0, %v4334_v33  ;;  %v4086_v1 = vld [vmem:[#allocation2 + $0x8] sm:$0xff] }
 0x501   : > { %v2999_v61 = vrot.slane %v2991_v17, %v4352_v48  ;;  %v3006_v62 = vrot.slane %v2992_v19, %v4352_v48  ;;  %v3015_v63 = vrot.slane %v3007_v59, %v4352_v48  ;;  %v3022_v53 = vrot.slane %v3008_v20, %v4352_v48 }
 0x502   : > { %v3990_v56 = vpack.c.bf16 %v618_v40, %v617_v47 }
 0x503   : > { %v3023_v10 = vcombine.high %v2999_v61, %v4130_v21  ;;  %v3024_v2 = vcombine.high %v3006_v62, %v4130_v21  ;;  %v3025_v3 = vcombine.high %v3015_v63, %v4130_v21  ;;  %v3026_v4 = vcombine.high %v3022_v53, %v4130_v21 }
 0x504   : > { %3991 = vmatprep.subr.bf16.mxu0 %v3990_v56 }
 0x505   : > { %v3035_v54 = vcombine.low %v2999_v61, %v3023_v10  ;;  %v3051_v6 = vcombine.low %v3006_v62, %v3024_v2  ;;  %v3103_v28 = vcombine.low %v3015_v63, %v3025_v3  ;;  %v3119_v7 = vcombine.low %v3022_v53, %v3026_v4  ;;  %3993 = vmatpush3.bf16.msra.mxu0 %v3990_v56  ;;  %v3764_v62 = vld [vmem:[%s4750_s6] ss:$0 sm:$0xff] }
 0x506   : > { %v4087_v2 = vld [vmem:[#allocation2] sm:$0xff] }
 0x507   : > { %v3110_v26 = vrot.slane %v3103_v28, %v4334_v33  ;;  %v3126_v27 = vrot.slane %v3119_v7, %v4334_v33  ;;  %v3042_v21 = vrot.slane %v3035_v54, %v4334_v33  ;;  %v3058_v24 = vrot.slane %v3051_v6, %v4334_v33 }
 0x509   : > { %v3127_v25 = vcombine.low %v3102_v23, %v3110_v26  ;;  %v3143_v30 = vcombine.low %v3118_v9, %v3126_v27  ;;  %v3059_v45 = vcombine.low %v3034_v11, %v3042_v21  ;;  %v3075_v31 = vcombine.low %v3050_v13, %v3058_v24 }
 0x50a   : > { %v3060_v32 = vcombine.high %v3034_v11, %v3042_v21  ;;  %v3076_v34 = vcombine.high %v3050_v13, %v3058_v24  ;;  %v3128_v35 = vcombine.high %v3102_v23, %v3110_v26  ;;  %v3144_v36 = vcombine.high %v3118_v9, %v3126_v27  ;;  %v620_v26 = vld [vmem:[%s4244_s13] sm:$0xff]  ;;  %v621_v27 = vld [vmem:[%s4244_s13 + $0x8] sm:$0xff]  ;;  %v622_v24 = vld [vmem:[%s4244_s13 + $0x10] sm:$0xff] }
 0x50b   : > { %v3135_v37 = vrot.slane %v3127_v25, %v4352_v48  ;;  %v3151_v38 = vrot.slane %v3143_v30, %v4352_v48  ;;  %v3067_v39 = vrot.slane %v3059_v45, %v4352_v48  ;;  %v3083_v33 = vrot.slane %v3075_v31, %v4352_v48  ;;  %v623_v25 = vld [vmem:[%s4244_s13 + $0x18] sm:$0xff]  ;;  %v625_v45 = vld [vmem:[%s4254_s18] sm:$0xff]  ;;  %v626_v31 = vld [vmem:[%s4254_s18 + $0x8] sm:$0xff] }
 0x50c   : > { %v3074_v42 = vrot.slane %v3060_v32, %v4352_v48  ;;  %v3090_v43 = vrot.slane %v3076_v34, %v4352_v48  ;;  %v3142_v44 = vrot.slane %v3128_v35, %v4352_v48  ;;  %v3158_v46 = vrot.slane %v3144_v36, %v4352_v48  ;;  %v627_v32 = vld [vmem:[%s4254_s18 + $0x10] sm:$0xff]  ;;  %v628_v35 = vld [vmem:[%s4254_s18 + $0x18] sm:$0xff] }
 0x50d   : > { %v3160_v41 = vcombine.high %v3135_v37, %v3151_v38  ;;  %v3092_v49 = vcombine.high %v3067_v39, %v3083_v33  ;;  %v3159_v50 = vcombine.low %v3135_v37, %v3151_v38  ;;  %v3091_v51 = vcombine.low %v3067_v39, %v3083_v33  ;;  %v629_v37 = vld [vmem:[%s4254_s18 + $0x20] sm:$0xff]  ;;  %v630_v38 = vld [vmem:[%s4254_s18 + $0x28] sm:$0xff] }
 0x50e   : > { %v3094_v52 = vcombine.high %v3074_v42, %v3090_v43  ;;  %v3093_v55 = vcombine.low %v3074_v42, %v3090_v43  ;;  %v3161_v14 = vcombine.low %v3142_v44, %v3158_v46  ;;  %v3162_v18 = vcombine.high %v3142_v44, %v3158_v46 }
 0x50f   : > { %3167 = vrot.lane.b32.xlu0 %v3160_v41, %s4135_s3  ;;  %3165 = vrot.lane.b32.xlu1 %v3092_v49, %s4135_s3  ;;  %v3994_v21 = vpack.c.bf16 %v621_v27, %v620_v26  ;;  %v3998_v30 = vpack.c.bf16 %v623_v25, %v622_v24  ;;  %v4002_v34 = vpack.c.bf16 %v626_v31, %v625_v45  ;;  %v3767_v41 = vld [vmem:[%s589_s25] ss:$0 sm:$0xff] }
 0x510   : > { %v4006_v36 = vpack.c.bf16 %v628_v35, %v627_v32  ;;  %v4010_v39 = vpack.c.bf16 %v630_v38, %v629_v37  ;;  %v3775_v24 = vld [vmem:[%s595_s14] ss:$0 sm:$0xff] }
 0x511   : > { %3995 = vmatprep.subr.bf16.mxu1 %v3994_v21  ;;  %4003 = vmatprep.subr.bf16.mxu0 %v4002_v34  ;;  %v3776_v45 = vld [vmem:[%s598_s15] ss:$0 sm:$0xff] }
 0x512   : > { %3997 = vmatpush3.bf16.msra.mxu1 %v3994_v21 }
 0x513   : > { %3181 = vrot.lane.b32.xlu0 %v3094_v52, %s4136_s16  ;;  %3173 = vrot.lane.b32.xlu1 %v3093_v55, %s4137_s23 }
 0x514   : > { %3999 = vmatprep.subr.bf16.mxu1 %v3998_v30 }
 0x516   : > { %4001 = vmatpush3.bf16.msra.mxu1 %v3998_v30 }
 0x517   : > { %3175 = vrot.lane.b32.xlu1 %v3161_v14, %s4137_s23 }
 0x51b   : > { %3183 = vrot.lane.b32.xlu1 %v3162_v18, %s4136_s16 }
 0x581   : > { %v3168_v48 = vpop.permute.xlu0 %3167  ;;  %v3166_v16 = vpop.permute.xlu1 %3165 }
 0x582   : > { %v3187_v57 = vsel %vm1610_vm3, %v3091_v51, %v3166_v16  ;;  %v3188_v59 = vsel %vm1610_vm3, %v3159_v50, %v3168_v48  ;;  %v3768_v50 = vld [vmem:[%s592_s5] ss:$0 sm:$0xff]  ;;  %v631_v48 = vld [vmem:[%s4254_s18 + $0x30] sm:$0xff]  ;;  %v632_v16 = vld [vmem:[%s4254_s18 + $0x38] sm:$0xff]  ;;  %s4752_s5 = scalar_lea.vmem %s4751_s29, %s4222_s27 }
 0x585   : > { %v3182_v12 = vpop.permute.xlu0 %3181  ;;  %v3174_v15 = vpop.permute.xlu1 %3173 }
 0x586   : > { %v3190_v58 = vsel %vm3189_vm4, %v3187_v57, %v3174_v15  ;;  %v4014_v57 = vpack.c.bf16 %v632_v16, %v631_v48 }
 0x587   : > { %v3193_v17 = vsel %vm3192_vm5, %v3190_v58, %v3182_v12  ;;  %v3769_v12 = vld [vmem:[%s4752_s5] ss:$0 sm:$0xff] }
 0x588   : > { %3945 = vmatprep.mubr.msk.f32.mxu0 %vm644_vm1, %v3193_v17 }
 0x589   : > { %v3176_v19 = vpop.permute.xlu1 %3175 }
 0x58a   : > { %v3191_v20 = vsel %vm3189_vm4, %v3188_v59, %v3176_v19 }
 0x58d   : > { %v3184_v60 = vpop.permute.xlu1 %3183 }
 0x58e   : > { %v3194_v61 = vsel %vm3192_vm5, %v3191_v20, %v3184_v60  ;;  %v3772_v60 = vld [vmem:[%s586_s21] ss:$0 sm:$0xff] }
 0x58f   : > { %3946 = vmatmul.mubr.msk.f32.vlgmr.msra.gmra.mrb[14].mxu0 %vm644_vm1, %v3194_v61 }
 0x590   : > { %4005 = vmatpush3.bf16.msra.mxu0 %v4002_v34 }
 0x591   : > { %4007 = vmatprep.subr.bf16.mxu0 %v4006_v36 }
 0x594   : > { %4009 = vmatpush3.bf16.msra.mxu0 %v4006_v36 }
 0x595   : > { %4011 = vmatprep.subr.bf16.mxu0 %v4010_v39 }
 0x598   : > { %4013 = vmatpush3.bf16.msra.mxu0 %v4010_v39 }
 0x599   : > { %4015 = vmatprep.subr.bf16.mxu0 %v4014_v57 }
 0x59c   : > { %4017 = vmatpush3.bf16.msra.mxu0 %v4014_v57 }
 0x662   : > { %v3947_v63 = vpop.f32.mrb[14].mxu0 }
 0x663   : > { %v3279_v53 = vadd.f32 %v3947_v63, %v3764_v62  ;;  %v3273_v5 = vpop.f32.mrb[15].mxu0 }
 0x664   : > { %v3274_v0 = vadd.f32 %v3764_v62, %v3273_v5 }
 0x665   : > { %v3283_v10 = vadd.f32 %v4086_v1, %v3279_v53 }
 0x666   : > { %v3282_v3 = vadd.f32 %v4087_v2, %v3274_v0 }
 0x667   : > { %v3287_v4 = vsel %vm644_vm1, %v3283_v10, 0.0 }
 0x668   : > { %3288 = vadd.xlane.f32.xlu1 %v3287_v4  ;;  %v3284_v23 = vsel %vm644_vm1, %v3282_v3, 0.0 }
 0x669   : > { %3285 = vadd.xlane.f32.xlu0 %v3284_v23 }
 0x6f5   : > { %v3289_v54 = vpop.xlane.xlu1 %3288 }
 0x6f6   : > { %v3292_v6 = vmul.f32 0.03125, %v3289_v54  ;;  %v3286_v28 = vpop.xlane.xlu0 %3285 }
 0x6f7   : > { %v3291_v7 = vmul.f32 0.03125, %v3286_v28 }
 0x6f8   : > { %v3294_v29 = vsub.f32 %v3283_v10, %v3292_v6 }
 0x6f9   : > { %v3293_v8 = vsub.f32 %v3282_v3, %v3291_v7 }
 0x6fa   : > { %v3296_v13 = vmul.f32 %v3294_v29, %v3294_v29 }
 0x6fb   : > { %v3295_v9 = vmul.f32 %v3293_v8, %v3293_v8 }
 0x6fc   : > { %v3300_v22 = vsel %vm644_vm1, %v3296_v13, 0.0 }
 0x6fd   : > { %v3297_v11 = vsel %vm644_vm1, %v3295_v9, 0.0 }
 0x6fe   : > { %3298 = vadd.xlane.f32.xlu0 %v3297_v11 }
 0x702   : > { %3301 = vadd.xlane.f32.xlu0 %v3300_v22 }
 0x78b   : > { %v3299_v33 = vpop.xlane.xlu0 %3298 }
 0x78c   : > { %v3303_v42 = vmul.f32 0.03125, %v3299_v33 }
 0x78e   : > { %v3305_v43 = vadd.f32 1e-05, %v3303_v42 }
 0x78f   : > { %v3302_v44 = vpop.xlane.xlu0 %3301 }
 0x790   : > { %4078 = vrsqrt.f32 %v3305_v43  ;;  %v3304_v46 = vmul.f32 0.03125, %v3302_v44 }
 0x792   : > { %v3306_v47 = vadd.f32 1e-05, %v3304_v46 }
 0x794   : > { %4080 = vrsqrt.f32 %v3306_v47 }
 0x79a   : > { %v4079_v40 = vpop.eup %4078 }
 0x79b   : > { %v3309_v49 = vmul.f32 %v4079_v40, %v3293_v8 }
 0x79d   : > { %v3317_v51 = vmul.f32 %v3767_v41, %v3309_v49 }
 0x79e   : > { %v4081_v52 = vpop.eup %4080 }
 0x79f   : > { %v3310_v55 = vmul.f32 %v4081_v52, %v3294_v29  ;;  %v3325_v14 = vadd.f32 %v3768_v50, %v3317_v51 }
 0x7a1   : > { %v3318_v18 = vmul.f32 %v3767_v41, %v3310_v55  ;;  %3956 = vmatprep.mubr.msk.f32.mxu1 %vm644_vm1, %v3325_v14 }
 0x7a3   : > { %v3326_v56 = vadd.f32 %v3768_v50, %v3318_v18 }
 0x7a5   : > { %3957 = vmatmul.mubr.msk.f32.vlgmr.msra.gmra.mrb[20].mxu1 %vm644_vm1, %v3326_v56 }
 0x878   : > { %v3958_v15 = vpop.f32.mrb[20].mxu1 }
 0x879   : > { %v3411_v58 = vadd.f32 %v3958_v15, %v3769_v12  ;;  %v3405_v17 = vpop.f32.mrb[21].mxu1 }
 0x87a   : > { %v3406_v19 = vadd.f32 %v3769_v12, %v3405_v17 }
 0x87b   : > { %v3415_v20 = vmax.f32 %v3411_v58, 0.0 }
 0x87c   : > { %v3414_v59 = vmax.f32 %v3406_v19, 0.0 }
 0x87e   : > { %3975 = vmatprep.mubr.msk.f32.mxu0 %vm3422_vm6, %v3414_v59 }
 0x87f   : > { %3976 = vmatmul.mubr.msk.f32.vlgmr.msra.gmra.mrb[16].mxu0 %vm3422_vm6, %v3415_v20 }
 0x952   : > { %v3977_v61 = vpop.f32.mrb[16].mxu0 }
 0x953   : > { %v3501_v62 = vadd.f32 %v3977_v61, %v3772_v60  ;;  %v3495_v63 = vpop.f32.mrb[17].mxu0 }
 0x954   : > { %v3496_v53 = vadd.f32 %v3772_v60, %v3495_v63 }
 0x955   : > { %v3505_v5 = vadd.f32 %v3501_v62, %v3326_v56 }
 0x956   : > { %v3504_v0 = vadd.f32 %v3496_v53, %v3325_v14 }
 0x957   : > { %v3509_v1 = vsel %vm644_vm1, %v3505_v5, 0.0 }
 0x958   : > { %3510 = vadd.xlane.f32.xlu0 %v3509_v1  ;;  %v3506_v10 = vsel %vm644_vm1, %v3504_v0, 0.0 }
 0x959   : > { %3507 = vadd.xlane.f32.xlu1 %v3506_v10 }
 0x9e5   : > { %v3511_v2 = vpop.xlane.xlu0 %3510 }
 0x9e6   : > { %v3513_v3 = vmul.f32 0.03125, %v3511_v2  ;;  %v3508_v4 = vpop.xlane.xlu1 %3507 }
 0x9e7   : > { %v3512_v23 = vmul.f32 0.03125, %v3508_v4 }
 0x9e8   : > { %v3515_v54 = vsub.f32 %v3505_v5, %v3513_v3 }
 0x9e9   : > { %v3514_v6 = vsub.f32 %v3504_v0, %v3512_v23 }
 0x9ea   : > { %v3517_v28 = vmul.f32 %v3515_v54, %v3515_v54 }
 0x9eb   : > { %v3516_v7 = vmul.f32 %v3514_v6, %v3514_v6 }
 0x9ec   : > { %v3521_v29 = vsel %vm644_vm1, %v3517_v28, 0.0 }
 0x9ed   : > { %3522 = vadd.xlane.f32.xlu0 %v3521_v29  ;;  %v3518_v8 = vsel %vm644_vm1, %v3516_v7, 0.0 }
 0x9ee   : > { %3519 = vadd.xlane.f32.xlu1 %v3518_v8 }
 0xa7a   : > { %v3523_v9 = vpop.xlane.xlu0 %3522 }
 0xa7b   : > { %v3525_v11 = vmul.f32 0.03125, %v3523_v9  ;;  %v3520_v13 = vpop.xlane.xlu1 %3519 }
 0xa7c   : > { %v3524_v22 = vmul.f32 0.03125, %v3520_v13 }
 0xa7d   : > { %v3527_v26 = vadd.f32 1e-05, %v3525_v11 }
 0xa7e   : > { %v3526_v27 = vadd.f32 1e-05, %v3524_v22 }
 0xa7f   : > { %4082 = vrsqrt.f32 %v3527_v26 }
 0xa80   : > { %4084 = vrsqrt.f32 %v3526_v27 }
 0xa89   : > { %v4083_v21 = vpop.eup %4082 }
 0xa8a   : > { %v4085_v25 = vpop.eup %4084  ;;  %v3531_v30 = vmul.f32 %v4083_v21, %v3515_v54 }
 0xa8b   : > { %v3530_v31 = vmul.f32 %v4085_v25, %v3514_v6  ;;  %3553 = sbr.rel (%p3777_p5) target bundleno = 2706 (0xa92), region = 80 }
 0xa8c   : > { %v3539_v32 = vmul.f32 %v3775_v24, %v3531_v30 }
 0xa8d   : > { %v3538_v34 = vmul.f32 %v3775_v24, %v3530_v31 }
 0xa8e   : > { %v3547_v35 = vadd.f32 %v3776_v45, %v3539_v32 }
 0xa8f   : > { %v3546_v36 = vadd.f32 %v3776_v45, %v3538_v34 }
 0xa90   : > { %3549 = vst.msk [vmem:[#allocation2 + $0x8] sm:$0xff] %vm644_vm1, %v3547_v35  ;;  %3555 = vst.msk [vmem:[#allocation3 + $0x8] sm:$0xff] (!%p3777_p5), %vm644_vm1, %v3547_v35 }
 0xa91   : > { %3548 = vst.msk [vmem:[#allocation2] sm:$0xff] %vm644_vm1, %v3546_v36  ;;  %3554 = vst.msk [vmem:[#allocation3] sm:$0xff] (!%p3777_p5), %vm644_vm1, %v3546_v36 }
 0xa92 PF: > { %p4022_p6 = scmp.eq.s32.totalorder %s4216_s26, 1  ;;  %s4138_s27 = smov [#allocation3]  }
 0xa93   : > { %s3562_s14 = sshll.u32 %s4138_s27, 4  ;;  %s3563_s14 = int_to_ptr.vmem [resolvable:$true] %s3562_s14 }
 0xa94   : > { %s4088_s15 = scalar_lea.vmem %s3563_s14, 256  ;;  %p4095_p10 = scmp.lt.s32.totalorder %s3563_s14, %s3563_s14 }
 0xa95   : > { %p4089_p7 = scmp.ne.s32.totalorder %s3563_s14, %s4088_s15  ;;  %p4096_p11 = scmp.lt.s32.totalorder %s4088_s15, %s4088_s15 }
 0xa97   : > { %p4090_p8 = pnand %p4089_p7, %p4022_p6  ;;  %p4097_p12 = por %p4096_p11, %p4095_p10 }
 0xa99   : > { %p4091_p9 = pneg %p4090_p8 }
 0xa9b   : > { %p4098_p13 = pnand %p4097_p12, %p4091_p9 }
 0xa9d   : > { %4101 = shalt.err (!%p4098_p13)
}
 0xa9e   : > { %s4753_s6 = sld [smem:[#allocation11_spill]] }
 0xaa4   : > { %s4102_s13 = scalar_lea.hbm %s4753_s6, 256 }
 0xaa5   : > { %p4103_p0 = scmp.ne.s32.totalorder %s4753_s6, %s4102_s13  ;;  %p4108_p3 = scmp.lt.u32.totalorder %s4102_s13, %s4753_s6 }
 0xaa7   : > { %p4104_p1 = pnand %p4103_p0, %p4022_p6 }
 0xaa9   : > { %p4105_p2 = pneg %p4104_p1 }
 0xaab   : > { %p4110_p4 = pnand %p4108_p3, %p4105_p2 }
 0xaad   : > { %4113 = shalt.err (!%p4110_p4)
}
 0xaae   : > { %s4139_s24 = smov 128  }
 0xaaf   : > { %4019 = dma.vmem_to_hbm [thread:$0]  (%p4022_p6), %s3563_s14, 256, %s4753_s6, [#allocation4], %s4139_s24, %s4139_s24, %s4135_s3  }
 0xab0   : > { %4119 = dma.done.wait (%p4022_p6), [#allocation4], 256  }
 0xab1   : > { %4121 = vsyncadd (%p4022_p6), [#allocation4], 4294967040 }
 0xab2 PF: > { %s4754_s30 = sld [smem:[#allocation6_spill]] }
 0xab8   : > { %s24_s25 = sadd.s32 1, %s4754_s30  }
 0xab9   : > { %p21_p5 = scmp.ge.s32.totalorder %s24_s25, 4  }
 0xabb   :  { %23 = sbr.rel (!%p21_p5) target bundleno = 7 (0x7), region = 140 }
 0xac2   :  { %3578 = vsyncpa [#allocation4], 1 }
 0xac3   :  { %3580 = vsyncpa [#allocation4 + $0x1], 1 }

</bundles_post_ra>
